<compile_context>
chip_gen: v7x
topology: tpu7x:2x2x1
jax: 0.10.0
libtpu: 0.0.40
codegen_flags: <defaults>
</compile_context>

<pallas_src>
import functools

import jax
import jax.numpy as jnp
import numpy as np
from jax import lax
from jax.experimental import pallas as pl
from jax.experimental.pallas import tpu as pltpu


def convblock_kernel(x_ref, m_ref, w1_ref, b1_ref, w2_ref, b2_ref,
                     w3_ref, b3_ref, ws_ref, bs_ref, out_ref, *,
                     block_b, H, W):
    """One grid step: block_b images, activations laid out as (C, lanes)."""
    N = block_b * H * W
    f32 = jnp.float32

    # Lane-concatenate the block's images: (Cin, block_b*H*W), spatial on lanes.
    if block_b == 1:
        x = x_ref[0]
    else:
        x = jnp.concatenate([x_ref[i] for i in range(block_b)], axis=-1)

    m9 = m_ref[...]                       # (9, N) border masks, resident

    def shift(v, off):
        # result[..., p] = v[..., p + off]; lanes that wrap across an image
        # (or array) boundary are either masked or never selected downstream.
        if off == 0:
            return v
        return pltpu.roll(v, (-off) % N, v.ndim - 1)

    def conv3x3_relu(act, w_ref, b_ref):
        # im2col on the lane axis: 9 rolled/masked copies (tap-major,
        # channel-minor rows) -> ONE MXU matmul with K = 9*Cin.
        rows = []
        t = 0
        for dy in (-1, 0, 1):
            for dx in (-1, 0, 1):
                rows.append(m9[t:t + 1, :] * shift(act, dy * W + dx))
                t += 1
        patches = jnp.concatenate(rows, axis=0)            # (9*Cin, N)
        return jnp.maximum(
            jnp.dot(w_ref[...], patches, preferred_element_type=f32)
            + b_ref[...], 0.0)

    h = conv3x3_relu(x, w1_ref, b1_ref)    # (Cin,  N)
    h = conv3x3_relu(h, w2_ref, b2_ref)    # (Cin,  N)
    h = conv3x3_relu(h, w3_ref, b3_ref)    # (Cout, N)

    # 2x2 max-pool, exact and VPU/XLU-only (no MXU rounding): the pooled value
    # for output pixel (yo, xo) lands on lane p = 2*yo*W + 2*xo.
    a = jnp.maximum(h, shift(h, 1))        # column pairs
    pooled = jnp.maximum(a, shift(a, W))   # row pairs

    # Skip conv (2x2, stride 2) on the same lane grid, derived from the input
    # already resident in VMEM (no second HBM stream / space-to-depth copy).
    srows = [shift(x, r * W + s) for r in (0, 1) for s in (0, 1)]
    spatch = jnp.concatenate(srows, axis=0)                 # (4*Cin, N)
    skip = (jnp.dot(ws_ref[...], spatch, preferred_element_type=f32)
            + bs_ref[...])

    # Single lane-dense, unmasked store.  The wrapper keeps only the
    # even-(y, x) lanes (a [::2, ::2] slice — pure layout plumbing).
    out_ref[0] = (pooled + skip).astype(out_ref.dtype)


def convblock_forward(x_nchw, params, *, block_b=None):
    """x_nchw: (B, Cin, H, W) float32 -> (B, Cout, H//2, W//2) float32."""
    w1, b1, w2, b2, w3, b3, ws, bs = params          # HWIO conv weights
    B, Cin, H, W = x_nchw.shape
    Cout = w3.shape[-1]
    Ho, Wo = H // 2, W // 2

    if block_b is None:
        # Fold pairs of images per grid step: amortizes the ~0.35us fixed
        # per-step cost and doubles matmul N / lane fill.  On v7x with a tiny
        # batch, pass block_b=1 so the grid keeps >=2 'parallel' programs and
        # both TensorCores stay busy.
        block_b = 2 if B % 2 == 0 else 1
    assert B % block_b == 0, (B, block_b)
    G = B // block_b
    N = block_b * H * W

    # NCHW is already channel-major: flattening (H, W) is a zero-copy reshape —
    # no transpose, no jnp.pad, no extra HBM round-trip before the kernel.
    x_flat = x_nchw.reshape(B, Cin, H * W)

    # Border-validity masks for the 9 conv taps over the lane axis (host
    # constants -> resident VMEM input; never rebuilt per grid step).  They
    # implement the padding=1 halo and block cross-image leakage from rolls.
    p = np.arange(N)
    yy, xx = (p % (H * W)) // W, p % W
    masks = np.stack(
        [((yy + dy >= 0) & (yy + dy < H) & (xx + dx >= 0) & (xx + dx < W))
         for dy in (-1, 0, 1) for dx in (-1, 0, 1)]).astype(np.float32)
    masks = jnp.asarray(masks)                                  # (9, N)

    # Flatten weights so each conv is one matmul; rows are tap-major,
    # channel-minor, matching the in-kernel im2col ordering.
    def flat(w):          # HWIO (kh, kw, ci, co) -> (co, kh*kw*ci)
        co = w.shape[-1]
        return jnp.transpose(w, (3, 0, 1, 2)).reshape(co, -1)

    w1t, w2t, w3t, wst = flat(w1), flat(w2), flat(w3), flat(ws)
    b1c, b2c = b1.reshape(Cin, 1), b2.reshape(Cin, 1)
    b3c, bsc = b3.reshape(Cout, 1), bs.reshape(Cout, 1)

    cfull = lambda a: pl.BlockSpec(a.shape, lambda g: (0,) * a.ndim)

    flops = 2 * B * H * W * Cin * (9 * Cin + 9 * Cin + 9 * Cout + 4 * Cout)
    bytes_accessed = 4 * (x_flat.size + G * Cout * N + int(masks.size) +
                          w1t.size + w2t.size + w3t.size + wst.size +
                          2 * Cin + 2 * Cout)

    slab = pl.pallas_call(
        functools.partial(convblock_kernel, block_b=block_b, H=H, W=W),
        out_shape=jax.ShapeDtypeStruct((G, Cout, N), jnp.float32),
        grid_spec=pltpu.PrefetchScalarGridSpec(
            num_scalar_prefetch=0,
            grid=(G,),
            in_specs=[
                pl.BlockSpec((block_b, Cin, H * W), lambda g: (g, 0, 0)),
                cfull(masks),
                cfull(w1t), cfull(b1c),
                cfull(w2t), cfull(b2c),
                cfull(w3t), cfull(b3c),
                cfull(wst), cfull(bsc),
            ],
            out_specs=pl.BlockSpec((1, Cout, N), lambda g: (g, 0, 0)),
        ),
        compiler_params=pltpu.CompilerParams(
            dimension_semantics=("parallel",)),
        cost_estimate=pl.CostEstimate(flops=int(flops), transcendentals=0,
                                      bytes_accessed=int(bytes_accessed)),
    )(x_flat, masks, w1t, b1c, w2t, b2c, w3t, b3c, wst, bsc)

    # Keep only the even-(y, x) lanes (2x2-pool stride) and restore NCHW.
    out = slab.reshape(G, Cout, block_b, H, W)[:, :, :, ::2, ::2]
    return out.transpose(0, 2, 1, 3, 4).reshape(B, Cout, Ho, Wo)


# ---------------------------------------------------------------------------
# Pure-JAX reference (correctness check only).
# ---------------------------------------------------------------------------
def _conv_ref(x, w, b, stride, pad):
    return lax.conv_general_dilated(
        x, w, window_strides=(stride, stride),
        padding=[(pad, pad), (pad, pad)],
        dimension_numbers=("NHWC", "HWIO", "NHWC")) + b


def convblock_ref(x_nchw, params):
    w1, b1, w2, b2, w3, b3, ws, bs = params
    x = jnp.transpose(x_nchw, (0, 2, 3, 1))
    h = jax.nn.relu(_conv_ref(x, w1, b1, 1, 1))
    h = jax.nn.relu(_conv_ref(h, w2, b2, 1, 1))
    h = jax.nn.relu(_conv_ref(h, w3, b3, 1, 1))
    pooled = lax.reduce_window(h, -jnp.inf, lax.max,
                               (1, 2, 2, 1), (1, 2, 2, 1), "VALID")
    skip = _conv_ref(x, ws, bs, 2, 0)
    return jnp.transpose(pooled + skip, (0, 3, 1, 2))


if __name__ == "__main__":
    B, Cin, Cout, H, W = 2, 4, 8, 16, 16

    key = jax.random.PRNGKey(0)
    ks = jax.random.split(key, 9)
    # Deterministic synthetic parameters (HWIO weight layout).
    w1 = 0.2 * jax.random.normal(ks[0], (3, 3, Cin, Cin), jnp.float32)
    b1 = 0.1 * jax.random.normal(ks[1], (Cin,), jnp.float32)
    w2 = 0.2 * jax.random.normal(ks[2], (3, 3, Cin, Cin), jnp.float32)
    b2 = 0.1 * jax.random.normal(ks[3], (Cin,), jnp.float32)
    w3 = 0.2 * jax.random.normal(ks[4], (3, 3, Cin, Cout), jnp.float32)
    b3 = 0.1 * jax.random.normal(ks[5], (Cout,), jnp.float32)
    ws = 0.2 * jax.random.normal(ks[6], (2, 2, Cin, Cout), jnp.float32)
    bs = 0.1 * jax.random.normal(ks[7], (Cout,), jnp.float32)
    params = (w1, b1, w2, b2, w3, b3, ws, bs)

    x = jax.random.normal(ks[8], (B, Cin, H, W), jnp.float32)  # NCHW like torch

    out = jax.block_until_ready(convblock_forward(x, params))
    ref = jax.block_until_ready(convblock_ref(x, params))

    assert out.shape == (B, Cout, H // 2, W // 2), out.shape
    # Tolerance deliberately 2e-4: the kernel's im2col matmuls and the
    # lax.conv reference both run f32 on the MXU at default precision; the
    # max-pool / selection path in the kernel is exact (VPU/XLU only).
    assert jnp.allclose(out, ref, rtol=2e-4, atol=2e-4), (
        float(jnp.max(jnp.abs(out - ref))))
    print("KERNEL_OK")
</pallas_src>

<mosaic_0001>
module attributes {stable_mosaic.version = 11 : i64} {
  func.func @convblock_kernel(%arg0: i32, %arg1: memref<2x4x256xf32, #tpu.memory_space<vmem>>, %arg2: memref<9x512xf32, #tpu.memory_space<vmem>>, %arg3: memref<4x36xf32, #tpu.memory_space<vmem>>, %arg4: memref<4x1xf32, #tpu.memory_space<vmem>>, %arg5: memref<4x36xf32, #tpu.memory_space<vmem>>, %arg6: memref<4x1xf32, #tpu.memory_space<vmem>>, %arg7: memref<8x36xf32, #tpu.memory_space<vmem>>, %arg8: memref<8x1xf32, #tpu.memory_space<vmem>>, %arg9: memref<8x16xf32, #tpu.memory_space<vmem>>, %arg10: memref<8x1xf32, #tpu.memory_space<vmem>>, %arg11: memref<1x8x512xf32, #tpu.memory_space<vmem>>) attributes {dimension_semantics = [#tpu.dimension_semantics<parallel>], iteration_bounds = array<i64: 1>, scalar_prefetch = 0 : i64, scratch_operands = 0 : i64, tpu.core_type = #tpu.core_type<tc>, window_params = [{transform_indices = @transform_0, window_bounds = array<i64: 2, 4, 256>}, {pipeline_mode = #tpu.pipeline_mode<synchronous>, transform_indices = @transform_1, window_bounds = array<i64: 9, 512>}, {pipeline_mode = #tpu.pipeline_mode<synchronous>, transform_indices = @transform_2, window_bounds = array<i64: 4, 36>}, {pipeline_mode = #tpu.pipeline_mode<synchronous>, transform_indices = @transform_3, window_bounds = array<i64: 4, 1>}, {pipeline_mode = #tpu.pipeline_mode<synchronous>, transform_indices = @transform_4, window_bounds = array<i64: 4, 36>}, {pipeline_mode = #tpu.pipeline_mode<synchronous>, transform_indices = @transform_5, window_bounds = array<i64: 4, 1>}, {pipeline_mode = #tpu.pipeline_mode<synchronous>, transform_indices = @transform_6, window_bounds = array<i64: 8, 36>}, {pipeline_mode = #tpu.pipeline_mode<synchronous>, transform_indices = @transform_7, window_bounds = array<i64: 8, 1>}, {pipeline_mode = #tpu.pipeline_mode<synchronous>, transform_indices = @transform_8, window_bounds = array<i64: 8, 16>}, {pipeline_mode = #tpu.pipeline_mode<synchronous>, transform_indices = @transform_9, window_bounds = array<i64: 8, 1>}, {transform_indices = @transform_10, window_bounds = array<i64: 1, 8, 512>}]} {
    %c0 = arith.constant 0 : index
    %c0_0 = arith.constant 0 : index
    %c0_1 = arith.constant 0 : index
    %0 = vector.load %arg1[%c0, %c0_0, %c0_1] : memref<2x4x256xf32, #tpu.memory_space<vmem>>, vector<1x4x256xf32>
    %1 = vector.shape_cast %0 : vector<1x4x256xf32> to vector<4x256xf32>
    %c1 = arith.constant 1 : index
    %c0_2 = arith.constant 0 : index
    %c0_3 = arith.constant 0 : index
    %2 = vector.load %arg1[%c1, %c0_2, %c0_3] : memref<2x4x256xf32, #tpu.memory_space<vmem>>, vector<1x4x256xf32>
    %3 = vector.shape_cast %2 : vector<1x4x256xf32> to vector<4x256xf32>
    %4 = tpu.concatenate %1, %3 in 1 : vector<4x256xf32>, vector<4x256xf32> -> vector<4x512xf32>
    %c0_4 = arith.constant 0 : index
    %c0_5 = arith.constant 0 : index
    %5 = vector.load %arg2[%c0_4, %c0_5] : memref<9x512xf32, #tpu.memory_space<vmem>>, vector<9x512xf32>
    %6 = vector.extract_strided_slice %5 {offsets = [0, 0], sizes = [1, 512], strides = [1, 1]} : vector<9x512xf32> to vector<1x512xf32>
    %c17_i32 = arith.constant 17 : i32
    %7 = tpu.dynamic_rotate %4 by %c17_i32 dim 1 : vector<4x512xf32>, i32 -> vector<4x512xf32>
    %8 = vector.broadcast %6 : vector<1x512xf32> to vector<4x512xf32>
    %9 = arith.mulf %8, %7 : vector<4x512xf32>
    %10 = vector.extract_strided_slice %5 {offsets = [1, 0], sizes = [1, 512], strides = [1, 1]} : vector<9x512xf32> to vector<1x512xf32>
    %c16_i32 = arith.constant 16 : i32
    %11 = tpu.dynamic_rotate %4 by %c16_i32 dim 1 : vector<4x512xf32>, i32 -> vector<4x512xf32>
    %12 = vector.broadcast %10 : vector<1x512xf32> to vector<4x512xf32>
    %13 = arith.mulf %12, %11 : vector<4x512xf32>
    %14 = vector.extract_strided_slice %5 {offsets = [2, 0], sizes = [1, 512], strides = [1, 1]} : vector<9x512xf32> to vector<1x512xf32>
    %c15_i32 = arith.constant 15 : i32
    %15 = tpu.dynamic_rotate %4 by %c15_i32 dim 1 : vector<4x512xf32>, i32 -> vector<4x512xf32>
    %16 = vector.broadcast %14 : vector<1x512xf32> to vector<4x512xf32>
    %17 = arith.mulf %16, %15 : vector<4x512xf32>
    %18 = vector.extract_strided_slice %5 {offsets = [3, 0], sizes = [1, 512], strides = [1, 1]} : vector<9x512xf32> to vector<1x512xf32>
    %c1_i32 = arith.constant 1 : i32
    %19 = tpu.dynamic_rotate %4 by %c1_i32 dim 1 : vector<4x512xf32>, i32 -> vector<4x512xf32>
    %20 = vector.broadcast %18 : vector<1x512xf32> to vector<4x512xf32>
    %21 = arith.mulf %20, %19 : vector<4x512xf32>
    %22 = vector.extract_strided_slice %5 {offsets = [4, 0], sizes = [1, 512], strides = [1, 1]} : vector<9x512xf32> to vector<1x512xf32>
    %23 = vector.broadcast %22 : vector<1x512xf32> to vector<4x512xf32>
    %24 = arith.mulf %23, %4 : vector<4x512xf32>
    %25 = vector.extract_strided_slice %5 {offsets = [5, 0], sizes = [1, 512], strides = [1, 1]} : vector<9x512xf32> to vector<1x512xf32>
    %c511_i32 = arith.constant 511 : i32
    %26 = tpu.dynamic_rotate %4 by %c511_i32 dim 1 : vector<4x512xf32>, i32 -> vector<4x512xf32>
    %27 = vector.broadcast %25 : vector<1x512xf32> to vector<4x512xf32>
    %28 = arith.mulf %27, %26 : vector<4x512xf32>
    %29 = vector.extract_strided_slice %5 {offsets = [6, 0], sizes = [1, 512], strides = [1, 1]} : vector<9x512xf32> to vector<1x512xf32>
    %c497_i32 = arith.constant 497 : i32
    %30 = tpu.dynamic_rotate %4 by %c497_i32 dim 1 : vector<4x512xf32>, i32 -> vector<4x512xf32>
    %31 = vector.broadcast %29 : vector<1x512xf32> to vector<4x512xf32>
    %32 = arith.mulf %31, %30 : vector<4x512xf32>
    %33 = vector.extract_strided_slice %5 {offsets = [7, 0], sizes = [1, 512], strides = [1, 1]} : vector<9x512xf32> to vector<1x512xf32>
    %c496_i32 = arith.constant 496 : i32
    %34 = tpu.dynamic_rotate %4 by %c496_i32 dim 1 : vector<4x512xf32>, i32 -> vector<4x512xf32>
    %35 = vector.broadcast %33 : vector<1x512xf32> to vector<4x512xf32>
    %36 = arith.mulf %35, %34 : vector<4x512xf32>
    %37 = vector.extract_strided_slice %5 {offsets = [8, 0], sizes = [1, 512], strides = [1, 1]} : vector<9x512xf32> to vector<1x512xf32>
    %c495_i32 = arith.constant 495 : i32
    %38 = tpu.dynamic_rotate %4 by %c495_i32 dim 1 : vector<4x512xf32>, i32 -> vector<4x512xf32>
    %39 = vector.broadcast %37 : vector<1x512xf32> to vector<4x512xf32>
    %40 = arith.mulf %39, %38 : vector<4x512xf32>
    %41 = tpu.concatenate %9, %13, %17, %21, %24, %28, %32, %36, %40 in 0 : vector<4x512xf32>, vector<4x512xf32>, vector<4x512xf32>, vector<4x512xf32>, vector<4x512xf32>, vector<4x512xf32>, vector<4x512xf32>, vector<4x512xf32>, vector<4x512xf32> -> vector<36x512xf32>
    %c0_6 = arith.constant 0 : index
    %c0_7 = arith.constant 0 : index
    %42 = vector.load %arg3[%c0_6, %c0_7] : memref<4x36xf32, #tpu.memory_space<vmem>>, vector<4x36xf32>
    %cst = arith.constant dense<0.000000e+00> : vector<4x512xf32>
    %43 = tpu.matmul %42, %41, %cst {dimension_numbers = #tpu.dot_dimension_numbers<[1], [0], [0], [1], [0, 0, 1, 1], [], []>} : vector<4x36xf32>, vector<36x512xf32>, vector<4x512xf32> -> vector<4x512xf32>
    %c0_8 = arith.constant 0 : index
    %c0_9 = arith.constant 0 : index
    %44 = vector.load %arg4[%c0_8, %c0_9] : memref<4x1xf32, #tpu.memory_space<vmem>>, vector<4x1xf32>
    %45 = vector.broadcast %44 : vector<4x1xf32> to vector<4x512xf32>
    %46 = arith.addf %43, %45 : vector<4x512xf32>
    %cst_10 = arith.constant 0.000000e+00 : f32
    %47 = vector.broadcast %cst_10 : f32 to vector<4x512xf32>
    %48 = arith.maximumf %46, %47 : vector<4x512xf32>
    %49 = vector.extract_strided_slice %5 {offsets = [0, 0], sizes = [1, 512], strides = [1, 1]} : vector<9x512xf32> to vector<1x512xf32>
    %c17_i32_11 = arith.constant 17 : i32
    %50 = tpu.dynamic_rotate %48 by %c17_i32_11 dim 1 : vector<4x512xf32>, i32 -> vector<4x512xf32>
    %51 = vector.broadcast %49 : vector<1x512xf32> to vector<4x512xf32>
    %52 = arith.mulf %51, %50 : vector<4x512xf32>
    %53 = vector.extract_strided_slice %5 {offsets = [1, 0], sizes = [1, 512], strides = [1, 1]} : vector<9x512xf32> to vector<1x512xf32>
    %c16_i32_12 = arith.constant 16 : i32
    %54 = tpu.dynamic_rotate %48 by %c16_i32_12 dim 1 : vector<4x512xf32>, i32 -> vector<4x512xf32>
    %55 = vector.broadcast %53 : vector<1x512xf32> to vector<4x512xf32>
    %56 = arith.mulf %55, %54 : vector<4x512xf32>
    %57 = vector.extract_strided_slice %5 {offsets = [2, 0], sizes = [1, 512], strides = [1, 1]} : vector<9x512xf32> to vector<1x512xf32>
    %c15_i32_13 = arith.constant 15 : i32
    %58 = tpu.dynamic_rotate %48 by %c15_i32_13 dim 1 : vector<4x512xf32>, i32 -> vector<4x512xf32>
    %59 = vector.broadcast %57 : vector<1x512xf32> to vector<4x512xf32>
    %60 = arith.mulf %59, %58 : vector<4x512xf32>
    %61 = vector.extract_strided_slice %5 {offsets = [3, 0], sizes = [1, 512], strides = [1, 1]} : vector<9x512xf32> to vector<1x512xf32>
    %c1_i32_14 = arith.constant 1 : i32
    %62 = tpu.dynamic_rotate %48 by %c1_i32_14 dim 1 : vector<4x512xf32>, i32 -> vector<4x512xf32>
    %63 = vector.broadcast %61 : vector<1x512xf32> to vector<4x512xf32>
    %64 = arith.mulf %63, %62 : vector<4x512xf32>
    %65 = vector.extract_strided_slice %5 {offsets = [4, 0], sizes = [1, 512], strides = [1, 1]} : vector<9x512xf32> to vector<1x512xf32>
    %66 = vector.broadcast %65 : vector<1x512xf32> to vector<4x512xf32>
    %67 = arith.mulf %66, %48 : vector<4x512xf32>
    %68 = vector.extract_strided_slice %5 {offsets = [5, 0], sizes = [1, 512], strides = [1, 1]} : vector<9x512xf32> to vector<1x512xf32>
    %c511_i32_15 = arith.constant 511 : i32
    %69 = tpu.dynamic_rotate %48 by %c511_i32_15 dim 1 : vector<4x512xf32>, i32 -> vector<4x512xf32>
    %70 = vector.broadcast %68 : vector<1x512xf32> to vector<4x512xf32>
    %71 = arith.mulf %70, %69 : vector<4x512xf32>
    %72 = vector.extract_strided_slice %5 {offsets = [6, 0], sizes = [1, 512], strides = [1, 1]} : vector<9x512xf32> to vector<1x512xf32>
    %c497_i32_16 = arith.constant 497 : i32
    %73 = tpu.dynamic_rotate %48 by %c497_i32_16 dim 1 : vector<4x512xf32>, i32 -> vector<4x512xf32>
    %74 = vector.broadcast %72 : vector<1x512xf32> to vector<4x512xf32>
    %75 = arith.mulf %74, %73 : vector<4x512xf32>
    %76 = vector.extract_strided_slice %5 {offsets = [7, 0], sizes = [1, 512], strides = [1, 1]} : vector<9x512xf32> to vector<1x512xf32>
    %c496_i32_17 = arith.constant 496 : i32
    %77 = tpu.dynamic_rotate %48 by %c496_i32_17 dim 1 : vector<4x512xf32>, i32 -> vector<4x512xf32>
    %78 = vector.broadcast %76 : vector<1x512xf32> to vector<4x512xf32>
    %79 = arith.mulf %78, %77 : vector<4x512xf32>
    %80 = vector.extract_strided_slice %5 {offsets = [8, 0], sizes = [1, 512], strides = [1, 1]} : vector<9x512xf32> to vector<1x512xf32>
    %c495_i32_18 = arith.constant 495 : i32
    %81 = tpu.dynamic_rotate %48 by %c495_i32_18 dim 1 : vector<4x512xf32>, i32 -> vector<4x512xf32>
    %82 = vector.broadcast %80 : vector<1x512xf32> to vector<4x512xf32>
    %83 = arith.mulf %82, %81 : vector<4x512xf32>
    %84 = tpu.concatenate %52, %56, %60, %64, %67, %71, %75, %79, %83 in 0 : vector<4x512xf32>, vector<4x512xf32>, vector<4x512xf32>, vector<4x512xf32>, vector<4x512xf32>, vector<4x512xf32>, vector<4x512xf32>, vector<4x512xf32>, vector<4x512xf32> -> vector<36x512xf32>
    %c0_19 = arith.constant 0 : index
    %c0_20 = arith.constant 0 : index
    %85 = vector.load %arg5[%c0_19, %c0_20] : memref<4x36xf32, #tpu.memory_space<vmem>>, vector<4x36xf32>
    %cst_21 = arith.constant dense<0.000000e+00> : vector<4x512xf32>
    %86 = tpu.matmul %85, %84, %cst_21 {dimension_numbers = #tpu.dot_dimension_numbers<[1], [0], [0], [1], [0, 0, 1, 1], [], []>} : vector<4x36xf32>, vector<36x512xf32>, vector<4x512xf32> -> vector<4x512xf32>
    %c0_22 = arith.constant 0 : index
    %c0_23 = arith.constant 0 : index
    %87 = vector.load %arg6[%c0_22, %c0_23] : memref<4x1xf32, #tpu.memory_space<vmem>>, vector<4x1xf32>
    %88 = vector.broadcast %87 : vector<4x1xf32> to vector<4x512xf32>
    %89 = arith.addf %86, %88 : vector<4x512xf32>
    %cst_24 = arith.constant 0.000000e+00 : f32
    %90 = vector.broadcast %cst_24 : f32 to vector<4x512xf32>
    %91 = arith.maximumf %89, %90 : vector<4x512xf32>
    %92 = vector.extract_strided_slice %5 {offsets = [0, 0], sizes = [1, 512], strides = [1, 1]} : vector<9x512xf32> to vector<1x512xf32>
    %c17_i32_25 = arith.constant 17 : i32
    %93 = tpu.dynamic_rotate %91 by %c17_i32_25 dim 1 : vector<4x512xf32>, i32 -> vector<4x512xf32>
    %94 = vector.broadcast %92 : vector<1x512xf32> to vector<4x512xf32>
    %95 = arith.mulf %94, %93 : vector<4x512xf32>
    %96 = vector.extract_strided_slice %5 {offsets = [1, 0], sizes = [1, 512], strides = [1, 1]} : vector<9x512xf32> to vector<1x512xf32>
    %c16_i32_26 = arith.constant 16 : i32
    %97 = tpu.dynamic_rotate %91 by %c16_i32_26 dim 1 : vector<4x512xf32>, i32 -> vector<4x512xf32>
    %98 = vector.broadcast %96 : vector<1x512xf32> to vector<4x512xf32>
    %99 = arith.mulf %98, %97 : vector<4x512xf32>
    %100 = vector.extract_strided_slice %5 {offsets = [2, 0], sizes = [1, 512], strides = [1, 1]} : vector<9x512xf32> to vector<1x512xf32>
    %c15_i32_27 = arith.constant 15 : i32
    %101 = tpu.dynamic_rotate %91 by %c15_i32_27 dim 1 : vector<4x512xf32>, i32 -> vector<4x512xf32>
    %102 = vector.broadcast %100 : vector<1x512xf32> to vector<4x512xf32>
    %103 = arith.mulf %102, %101 : vector<4x512xf32>
    %104 = vector.extract_strided_slice %5 {offsets = [3, 0], sizes = [1, 512], strides = [1, 1]} : vector<9x512xf32> to vector<1x512xf32>
    %c1_i32_28 = arith.constant 1 : i32
    %105 = tpu.dynamic_rotate %91 by %c1_i32_28 dim 1 : vector<4x512xf32>, i32 -> vector<4x512xf32>
    %106 = vector.broadcast %104 : vector<1x512xf32> to vector<4x512xf32>
    %107 = arith.mulf %106, %105 : vector<4x512xf32>
    %108 = vector.extract_strided_slice %5 {offsets = [4, 0], sizes = [1, 512], strides = [1, 1]} : vector<9x512xf32> to vector<1x512xf32>
    %109 = vector.broadcast %108 : vector<1x512xf32> to vector<4x512xf32>
    %110 = arith.mulf %109, %91 : vector<4x512xf32>
    %111 = vector.extract_strided_slice %5 {offsets = [5, 0], sizes = [1, 512], strides = [1, 1]} : vector<9x512xf32> to vector<1x512xf32>
    %c511_i32_29 = arith.constant 511 : i32
    %112 = tpu.dynamic_rotate %91 by %c511_i32_29 dim 1 : vector<4x512xf32>, i32 -> vector<4x512xf32>
    %113 = vector.broadcast %111 : vector<1x512xf32> to vector<4x512xf32>
    %114 = arith.mulf %113, %112 : vector<4x512xf32>
    %115 = vector.extract_strided_slice %5 {offsets = [6, 0], sizes = [1, 512], strides = [1, 1]} : vector<9x512xf32> to vector<1x512xf32>
    %c497_i32_30 = arith.constant 497 : i32
    %116 = tpu.dynamic_rotate %91 by %c497_i32_30 dim 1 : vector<4x512xf32>, i32 -> vector<4x512xf32>
    %117 = vector.broadcast %115 : vector<1x512xf32> to vector<4x512xf32>
    %118 = arith.mulf %117, %116 : vector<4x512xf32>
    %119 = vector.extract_strided_slice %5 {offsets = [7, 0], sizes = [1, 512], strides = [1, 1]} : vector<9x512xf32> to vector<1x512xf32>
    %c496_i32_31 = arith.constant 496 : i32
    %120 = tpu.dynamic_rotate %91 by %c496_i32_31 dim 1 : vector<4x512xf32>, i32 -> vector<4x512xf32>
    %121 = vector.broadcast %119 : vector<1x512xf32> to vector<4x512xf32>
    %122 = arith.mulf %121, %120 : vector<4x512xf32>
    %123 = vector.extract_strided_slice %5 {offsets = [8, 0], sizes = [1, 512], strides = [1, 1]} : vector<9x512xf32> to vector<1x512xf32>
    %c495_i32_32 = arith.constant 495 : i32
    %124 = tpu.dynamic_rotate %91 by %c495_i32_32 dim 1 : vector<4x512xf32>, i32 -> vector<4x512xf32>
    %125 = vector.broadcast %123 : vector<1x512xf32> to vector<4x512xf32>
    %126 = arith.mulf %125, %124 : vector<4x512xf32>
    %127 = tpu.concatenate %95, %99, %103, %107, %110, %114, %118, %122, %126 in 0 : vector<4x512xf32>, vector<4x512xf32>, vector<4x512xf32>, vector<4x512xf32>, vector<4x512xf32>, vector<4x512xf32>, vector<4x512xf32>, vector<4x512xf32>, vector<4x512xf32> -> vector<36x512xf32>
    %c0_33 = arith.constant 0 : index
    %c0_34 = arith.constant 0 : index
    %128 = vector.load %arg7[%c0_33, %c0_34] : memref<8x36xf32, #tpu.memory_space<vmem>>, vector<8x36xf32>
    %cst_35 = arith.constant dense<0.000000e+00> : vector<8x512xf32>
    %129 = tpu.matmul %128, %127, %cst_35 {dimension_numbers = #tpu.dot_dimension_numbers<[1], [0], [0], [1], [0, 0, 1, 1], [], []>} : vector<8x36xf32>, vector<36x512xf32>, vector<8x512xf32> -> vector<8x512xf32>
    %c0_36 = arith.constant 0 : index
    %c0_37 = arith.constant 0 : index
    %130 = vector.load %arg8[%c0_36, %c0_37] : memref<8x1xf32, #tpu.memory_space<vmem>>, vector<8x1xf32>
    %131 = vector.broadcast %130 : vector<8x1xf32> to vector<8x512xf32>
    %132 = arith.addf %129, %131 : vector<8x512xf32>
    %cst_38 = arith.constant 0.000000e+00 : f32
    %133 = vector.broadcast %cst_38 : f32 to vector<8x512xf32>
    %134 = arith.maximumf %132, %133 : vector<8x512xf32>
    %c511_i32_39 = arith.constant 511 : i32
    %135 = tpu.dynamic_rotate %134 by %c511_i32_39 dim 1 : vector<8x512xf32>, i32 -> vector<8x512xf32>
    %136 = arith.maximumf %134, %135 : vector<8x512xf32>
    %c496_i32_40 = arith.constant 496 : i32
    %137 = tpu.dynamic_rotate %136 by %c496_i32_40 dim 1 : vector<8x512xf32>, i32 -> vector<8x512xf32>
    %138 = arith.maximumf %136, %137 : vector<8x512xf32>
    %c511_i32_41 = arith.constant 511 : i32
    %139 = tpu.dynamic_rotate %4 by %c511_i32_41 dim 1 : vector<4x512xf32>, i32 -> vector<4x512xf32>
    %c496_i32_42 = arith.constant 496 : i32
    %140 = tpu.dynamic_rotate %4 by %c496_i32_42 dim 1 : vector<4x512xf32>, i32 -> vector<4x512xf32>
    %c495_i32_43 = arith.constant 495 : i32
    %141 = tpu.dynamic_rotate %4 by %c495_i32_43 dim 1 : vector<4x512xf32>, i32 -> vector<4x512xf32>
    %142 = tpu.concatenate %4, %139, %140, %141 in 0 : vector<4x512xf32>, vector<4x512xf32>, vector<4x512xf32>, vector<4x512xf32> -> vector<16x512xf32>
    %c0_44 = arith.constant 0 : index
    %c0_45 = arith.constant 0 : index
    %143 = vector.load %arg9[%c0_44, %c0_45] : memref<8x16xf32, #tpu.memory_space<vmem>>, vector<8x16xf32>
    %cst_46 = arith.constant dense<0.000000e+00> : vector<8x512xf32>
    %144 = tpu.matmul %143, %142, %cst_46 {dimension_numbers = #tpu.dot_dimension_numbers<[1], [0], [0], [1], [0, 0, 1, 1], [], []>} : vector<8x16xf32>, vector<16x512xf32>, vector<8x512xf32> -> vector<8x512xf32>
    %c0_47 = arith.constant 0 : index
    %c0_48 = arith.constant 0 : index
    %145 = vector.load %arg10[%c0_47, %c0_48] : memref<8x1xf32, #tpu.memory_space<vmem>>, vector<8x1xf32>
    %146 = vector.broadcast %145 : vector<8x1xf32> to vector<8x512xf32>
    %147 = arith.addf %144, %146 : vector<8x512xf32>
    %148 = arith.addf %138, %147 : vector<8x512xf32>
    %c0_49 = arith.constant 0 : index
    %c0_50 = arith.constant 0 : index
    %c0_51 = arith.constant 0 : index
    %149 = vector.load %arg11[%c0_49, %c0_50, %c0_51] : memref<1x8x512xf32, #tpu.memory_space<vmem>>, vector<1x8x512xf32>
    %150 = vector.shape_cast %149 : vector<1x8x512xf32> to vector<8x512xf32>
    %151 = vector.shape_cast %148 : vector<8x512xf32> to vector<1x8x512xf32>
    tpu.vector_store %arg11[%c0_49, %c0_50, %c0_51], %151 {strides = array<i32>} : memref<1x8x512xf32, #tpu.memory_space<vmem>>, vector<1x8x512xf32>,
    return
  }
  func.func @transform_0(%arg0: i32) -> (i32, i32, i32) {
    %c0_i32 = arith.constant 0 : i32
    %c0_i32_0 = arith.constant 0 : i32
    %c0_i32_1 = arith.constant 0 : i32
    return %arg0, %c0_i32, %c0_i32_0 : i32, i32, i32
  }
  func.func @transform_1(%arg0: i32) -> (i32, i32) {
    %c0_i32 = arith.constant 0 : i32
    %c0_i32_0 = arith.constant 0 : i32
    %c0_i32_1 = arith.constant 0 : i32
    return %c0_i32, %c0_i32_0 : i32, i32
  }
  func.func @transform_2(%arg0: i32) -> (i32, i32) {
    %c0_i32 = arith.constant 0 : i32
    %c0_i32_0 = arith.constant 0 : i32
    %c0_i32_1 = arith.constant 0 : i32
    return %c0_i32, %c0_i32_0 : i32, i32
  }
  func.func @transform_3(%arg0: i32) -> (i32, i32) {
    %c0_i32 = arith.constant 0 : i32
    %c0_i32_0 = arith.constant 0 : i32
    %c0_i32_1 = arith.constant 0 : i32
    return %c0_i32, %c0_i32_0 : i32, i32
  }
  func.func @transform_4(%arg0: i32) -> (i32, i32) {
    %c0_i32 = arith.constant 0 : i32
    %c0_i32_0 = arith.constant 0 : i32
    %c0_i32_1 = arith.constant 0 : i32
    return %c0_i32, %c0_i32_0 : i32, i32
  }
  func.func @transform_5(%arg0: i32) -> (i32, i32) {
    %c0_i32 = arith.constant 0 : i32
    %c0_i32_0 = arith.constant 0 : i32
    %c0_i32_1 = arith.constant 0 : i32
    return %c0_i32, %c0_i32_0 : i32, i32
  }
  func.func @transform_6(%arg0: i32) -> (i32, i32) {
    %c0_i32 = arith.constant 0 : i32
    %c0_i32_0 = arith.constant 0 : i32
    %c0_i32_1 = arith.constant 0 : i32
    return %c0_i32, %c0_i32_0 : i32, i32
  }
  func.func @transform_7(%arg0: i32) -> (i32, i32) {
    %c0_i32 = arith.constant 0 : i32
    %c0_i32_0 = arith.constant 0 : i32
    %c0_i32_1 = arith.constant 0 : i32
    return %c0_i32, %c0_i32_0 : i32, i32
  }
  func.func @transform_8(%arg0: i32) -> (i32, i32) {
    %c0_i32 = arith.constant 0 : i32
    %c0_i32_0 = arith.constant 0 : i32
    %c0_i32_1 = arith.constant 0 : i32
    return %c0_i32, %c0_i32_0 : i32, i32
  }
  func.func @transform_9(%arg0: i32) -> (i32, i32) {
    %c0_i32 = arith.constant 0 : i32
    %c0_i32_0 = arith.constant 0 : i32
    %c0_i32_1 = arith.constant 0 : i32
    return %c0_i32, %c0_i32_0 : i32, i32
  }
  func.func @transform_10(%arg0: i32) -> (i32, i32, i32) {
    %c0_i32 = arith.constant 0 : i32
    %c0_i32_0 = arith.constant 0 : i32
    %c0_i32_1 = arith.constant 0 : i32
    return %arg0, %c0_i32, %c0_i32_0 : i32, i32, i32
  }
}

</mosaic_0001>

<bundles_post_ra>
// kernel: tpu_custom_call.1
= control target key start
LH: loop header
LB: loop body
LE: loop exit
PB: predicated region body
PF: predicated region fallthrough
CT: control target
= control target key end

     0   :  { %15 = vsyncpa [#allocation3], 0  ;;  %s2715_s0 = inlined_call_operand.vmem [shape: f32[2,4,256], index: 0, kind: input, shape index: {}]   ;;  %s2716_s1 = inlined_call_operand.hbm [shape: f32[9,512], index: 1, kind: input, shape index: {}]   ;;  %s2717_s2 = inlined_call_operand.hbm [shape: f32[4,36], index: 2, kind: input, shape index: {}]   ;;  %s2718_s3 = inlined_call_operand.vmem [shape: f32[4,1], index: 3, kind: input, shape index: {}]   ;;  %s2719_s4 = inlined_call_operand.vmem [shape: f32[4,36], index: 4, kind: input, shape index: {}]   ;;  %s2720_s5 = inlined_call_operand.vmem [shape: f32[4,1], index: 5, kind: input, shape index: {}]   ;;  %s2721_s6 = inlined_call_operand.vmem [shape: f32[8,36], index: 6, kind: input, shape index: {}]   ;;  %s2722_s7 = inlined_call_operand.vmem [shape: f32[8,1], index: 7, kind: input, shape index: {}]   ;;  %s2723_s8 = inlined_call_operand.vmem [shape: f32[8,16], index: 8, kind: input, shape index: {}]   ;;  %s2724_s9 = inlined_call_operand.vmem [shape: f32[8,1], index: 9, kind: input, shape index: {}]   ;;  %s2725_s10 = inlined_call_operand.hbm [shape: f32[1,8,512], index: 10, kind: output, shape index: {}]  }
   0x1   :  { %16 = vsyncpa [#allocation6], 0 }
   0x2   :  { %17 = vsyncpa [#allocation4], 0  ;;  %s1740_s13 = smov [#allocation2]   ;;  %s1668_s17 = scalar_lea.hbm %s2716_s1, 1024 }
   0x3   :  { %s25_s14 = sshll.u32 %s1740_s13, 4  ;;  %p1669_p0 = scmp.ne.s32.totalorder %s2716_s1, %s1668_s17  ;;  %s26_s14 = int_to_ptr.vmem [resolvable:$true] %s25_s14 }
   0x4   :  { %p1672_p1 = scmp.lt.u32.totalorder %s1668_s17, %s2716_s1 }
   0x6   :  { %p1674_p2 = pnand %p1672_p1, %p1669_p0 }
   0x8   :  { %1677 = shalt.err (!%p1674_p2)
}
   0x9   :  { %s1678_s22 = scalar_lea.vmem %s26_s14, 1024  ;;  %p1683_p4 = scmp.lt.s32.totalorder %s26_s14, %s26_s14 }
   0xa   :  { %p1679_p3 = scmp.ne.s32.totalorder %s26_s14, %s1678_s22  ;;  %p1684_p5 = scmp.lt.s32.totalorder %s1678_s22, %s1678_s22 }
   0xc   :  { %p1685_p6 = por %p1684_p5, %p1683_p4 }
   0xe   :  { %p1686_p7 = pnand %p1685_p6, %p1679_p3 }
  0x10   :  { %1689 = shalt.err (!%p1686_p7)
}
  0x11   :  { %s1741_s23 = smov 512   ;;  %s1742_s24 = smov 32  }
  0x12   :  { %31 = dma.hbm_to_vmem [thread:$0]  %s2716_s1, 1024, %s26_s14, [#allocation3], %s1741_s23, %s1741_s23, %s1742_s24  }
  0x13   :  { %s1743_s27 = smov [#allocation5]   ;;  %s1690_s11 = scalar_lea.hbm %s2717_s2, 64 }
  0x14   :  { %s38_s28 = sshll.u32 %s1743_s27, 4  ;;  %p1691_p8 = scmp.ne.s32.totalorder %s2717_s2, %s1690_s11  ;;  %s39_s28 = int_to_ptr.vmem [resolvable:$true] %s38_s28 }
  0x15   :  { %p1694_p9 = scmp.lt.u32.totalorder %s1690_s11, %s2717_s2 }
  0x17   :  { %p1696_p10 = pnand %p1694_p9, %p1691_p8 }
  0x19   :  { %1699 = shalt.err (!%p1696_p10)
}
  0x1a   :  { %s1700_s17 = scalar_lea.vmem %s39_s28, 64  ;;  %p1705_p12 = scmp.lt.s32.totalorder %s39_s28, %s39_s28 }
  0x1b   :  { %p1701_p11 = scmp.ne.s32.totalorder %s39_s28, %s1700_s17  ;;  %p1706_p13 = scmp.lt.s32.totalorder %s1700_s17, %s1700_s17 }
  0x1d   :  { %p1707_p0 = por %p1706_p13, %p1705_p12 }
  0x1f   :  { %p1708_p1 = pnand %p1707_p0, %p1701_p11 }
  0x21   :  { %1711 = shalt.err (!%p1708_p1)
}
  0x22   :  { %41 = dma.hbm_to_vmem [thread:$0]  %s2717_s2, 64, %s39_s28, [#allocation6]  }
  0x23   :  { %1734 = dma.done.wait [#allocation3], 1024  }
  0x24   :  { %1735 = vsyncadd [#allocation3], 4294966272 }
  0x25   :  { %1736 = dma.done.wait [#allocation6], 64  }
  0x26   :  { %1737 = vsyncadd [#allocation6], 4294967232  ;;  %v1837_v0 = vld [vmem:[%s2715_s0 + $0x8] sm:$0xff]  ;;  %v1842_v1 = vld [vmem:[%s2715_s0] sm:$0xff]  ;;  %s1744_s22 = smov 16   ;;  %s1745_s2 = smov 1   ;;  %v87_v9 = vlaneseq }
  0x27   :  { %118 = vrot.lane.b32.xlu1 %v1837_v0, %s1744_s22  ;;  %114 = vrot.lane.b32.xlu0 %v1842_v1, %s1744_s22  ;;  %v1850_v2 = vcombine.high %v1837_v0, %v1837_v0  ;;  %v1858_v3 = vcombine.high %v1842_v1, %v1842_v1  ;;  %s1746_s0 = smov 17   ;;  %s1747_s23 = smov 15   ;;  %v2726_v4 = vmov 0.0   ;;  %v1752_v5 = vmov 0   ;;  %v431_v6 = vld [vmem:[%s2718_s3] sm:$0xf] }
  0x28   :  { %s1748_s24 = smov 127   ;;  %s1749_s25 = smov 112   ;;  %517 = vmatprep.mubr.f32.mxu0 %v2726_v4  ;;  %588 = vmatprep.mubr.f32.mxu1 %v2726_v4  ;;  %v1921_v12 = vshrl.u32 %v87_v9, 7  ;;  %v1923_v15 = vand.u32 127, %v87_v9  ;;  %v1927_v18 = vld [vmem:[#allocation2] sm:$0xff]  ;;  %v1929_v19 = vld [vmem:[#allocation2 + $0x18] sm:$0xff] }
  0x29   :  { %s1750_s26 = smov 113   ;;  %1664 = vset.pattern.permute.xlu0 %v1752_v5  ;;  %1665 = vset.pattern.permute.xlu1 %v1752_v5  ;;  %s1753_s27 = smov 111   ;;  %v1931_v20 = vld [vmem:[#allocation2 + $0x8] sm:$0xff]  ;;  %v1933_v23 = vld [vmem:[#allocation2 + $0x10] sm:$0xff]  ;;  %vm413_vm3 = vcmask 1043456   ;;  %vm437_vm9 = vcmask 293888  }
  0x2a   :  { %v129_v16 = vsub.s32 1, %v1921_v12  ;;  %v195_v17 = vsub.s32 3, %v1921_v12  ;;  %v96_v24 = vsub.s32 0, %v1921_v12  ;;  %vm122_vm0 = vcmp.lt.s32.totalorder %v1923_v15, 16 }
  0x2b   :  { %120 = vrot.lane.b32.xlu1 %v1850_v2, %s1744_s22  ;;  %180 = vrot.lane.b32.xlu0 %v1842_v1, %s1745_s2  ;;  %vm188_vm1 = vcmp.lt.s32.totalorder %v1923_v15, 1  ;;  %v162_v33 = vsub.s32 2, %v1921_v12  ;;  %vm89_vm2 = vcmp.lt.s32.totalorder %v1923_v15, 17  ;;  %vm155_vm4 = vcmp.lt.s32.totalorder %v1923_v15, 15 }
  0x2c   :  { %v1938_v25 = vrot.slane %v1927_v18, %v129_v16  ;;  %v1941_v26 = vrot.slane %v1929_v19, %v129_v16  ;;  %v1945_v27 = vrot.slane %v1931_v20, %v195_v17  ;;  %v1948_v28 = vrot.slane %v1931_v20, %v129_v16 }
  0x2d   :  { %v1951_v29 = vrot.slane %v1933_v23, %v129_v16  ;;  %v1954_v30 = vrot.slane %v1927_v18, %v195_v17  ;;  %v1958_v34 = vrot.slane %v1933_v23, %v195_v17  ;;  %v1961_v35 = vrot.slane %v1929_v19, %v195_v17 }
  0x2e   :  { %v1965_v36 = vrot.slane %v1931_v20, %v96_v24  ;;  %v1972_v39 = vrot.slane %v1927_v18, %v96_v24  ;;  %v1979_v42 = vrot.slane %v1933_v23, %v96_v24  ;;  %v1982_v43 = vrot.slane %v1929_v19, %v96_v24 }
  0x2f   :  { %182 = vrot.lane.b32.xlu1 %v1858_v3, %s1745_s2  ;;  %116 = vrot.lane.b32.xlu0 %v1858_v3, %s1744_s22  ;;  %v1990_v48 = vrot.slane %v1931_v20, %v162_v33  ;;  %v2001_v55 = vrot.slane %v1927_v18, %v162_v33  ;;  %v2004_v56 = vrot.slane %v1933_v23, %v162_v33  ;;  %vm241_vm5 = vcmp.lt.s32.totalorder %v1923_v15, 127 }
  0x30   :  { %v2011_v60 = vrot.slane %v1929_v19, %v162_v33  ;;  %vm307_vm6 = vcmp.lt.s32.totalorder %v1923_v15, 112  ;;  %vm274_vm7 = vcmp.lt.s32.totalorder %v1923_v15, 113  ;;  %vm340_vm8 = vcmp.lt.s32.totalorder %v1923_v15, 111 }
  0x31   :  { %vm1398_vm10 = vcmask 130048  }
  0x33   :  { %186 = vrot.lane.b32.xlu1 %v1850_v2, %s1745_s2  ;;  %184 = vrot.lane.b32.xlu0 %v1837_v0, %s1745_s2 }
  0x37   :  { %81 = vrot.lane.b32.xlu1 %v1858_v3, %s1746_s0  ;;  %79 = vrot.lane.b32.xlu0 %v1842_v1, %s1746_s0 }
  0x3b   :  { %85 = vrot.lane.b32.xlu1 %v1850_v2, %s1746_s0  ;;  %83 = vrot.lane.b32.xlu0 %v1837_v0, %s1746_s0 }
  0x3f   :  { %149 = vrot.lane.b32.xlu1 %v1858_v3, %s1747_s23  ;;  %147 = vrot.lane.b32.xlu0 %v1842_v1, %s1747_s23 }
  0x43   :  { %153 = vrot.lane.b32.xlu1 %v1850_v2, %s1747_s23  ;;  %151 = vrot.lane.b32.xlu0 %v1837_v0, %s1747_s23 }
  0x47   :  { %235 = vrot.lane.b32.xlu1 %v1858_v3, %s1748_s24  ;;  %233 = vrot.lane.b32.xlu0 %v1842_v1, %s1748_s24 }
  0x4b   :  { %239 = vrot.lane.b32.xlu1 %v1850_v2, %s1748_s24  ;;  %237 = vrot.lane.b32.xlu0 %v1837_v0, %s1748_s24 }
  0x4f   :  { %301 = vrot.lane.b32.xlu1 %v1858_v3, %s1749_s25  ;;  %299 = vrot.lane.b32.xlu0 %v1842_v1, %s1749_s25 }
  0x53   :  { %305 = vrot.lane.b32.xlu1 %v1850_v2, %s1749_s25  ;;  %303 = vrot.lane.b32.xlu0 %v1837_v0, %s1749_s25 }
  0x57   :  { %268 = vrot.lane.b32.xlu1 %v1858_v3, %s1750_s26  ;;  %266 = vrot.lane.b32.xlu0 %v1842_v1, %s1750_s26 }
  0x5b   :  { %272 = vrot.lane.b32.xlu1 %v1850_v2, %s1750_s26  ;;  %270 = vrot.lane.b32.xlu0 %v1837_v0, %s1750_s26 }
  0x5f   :  { %334 = vrot.lane.b32.xlu1 %v1858_v3, %s1753_s27  ;;  %332 = vrot.lane.b32.xlu0 %v1842_v1, %s1753_s27 }
  0x63   :  { %338 = vrot.lane.b32.xlu1 %v1850_v2, %s1753_s27  ;;  %336 = vrot.lane.b32.xlu0 %v1837_v0, %s1753_s27 }
  0x67   :  { %434 = vperm.xlu0 %1664, %v431_v6  }
  0x99   :  { %v119_v7 = vpop.permute.xlu1 %118  ;;  %v115_v8 = vpop.permute.xlu0 %114 }
  0x9d   :  { %v121_v10 = vpop.permute.xlu1 %120  ;;  %v181_v11 = vpop.permute.xlu0 %180 }
  0x9e   :  { %v123_v37 = vsel %vm122_vm0, %v119_v7, %v121_v10  ;;  %v126_v38 = vsel %vm122_vm0, %v121_v10, %v115_v8 }
  0x9f   :  { %v143_v49 = vmul.f32 %v1938_v25, %v126_v38  ;;  %v146_v50 = vmul.f32 %v1941_v26, %v123_v37 }
  0xa1   :  { %v183_v13 = vpop.permute.xlu1 %182  ;;  %v117_v14 = vpop.permute.xlu0 %116  ;;  %v372_v9 = vrot.slane %v146_v50, 4 }
  0xa2   :  { %v191_v40 = vsel %vm188_vm1, %v181_v11, %v183_v13  ;;  %v125_v41 = vsel %vm122_vm0, %v115_v8, %v117_v14  ;;  %v124_v44 = vsel %vm122_vm0, %v117_v14, %v119_v7  ;;  %v369_v8 = vrot.slane %v143_v49, 4 }
  0xa3   :  { %v210_v53 = vmul.f32 %v1945_v27, %v191_v40  ;;  %v144_v54 = vmul.f32 %v1948_v28, %v125_v41  ;;  %v145_v57 = vmul.f32 %v1951_v29, %v124_v44 }
  0xa5   :  { %v187_v21 = vpop.permute.xlu1 %186  ;;  %v185_v22 = vpop.permute.xlu0 %184  ;;  %v370_v14 = vrot.slane %v144_v54, 4 }
  0xa6   :  { %v192_v45 = vsel %vm188_vm1, %v187_v21, %v181_v11  ;;  %v190_v51 = vsel %vm188_vm1, %v183_v13, %v185_v22  ;;  %v189_v59 = vsel %vm188_vm1, %v185_v22, %v187_v21  ;;  %v382_v13 = vrot.slane %v210_v53, 4 }
  0xa7   :  { %v209_v58 = vmul.f32 %v1954_v30, %v192_v45  ;;  %v211_v61 = vmul.f32 %v1958_v34, %v190_v51  ;;  %v212_v16 = vmul.f32 %v1961_v35, %v189_v59  ;;  %v371_v21 = vrot.slane %v145_v57, 4 }
  0xa9   :  { %v82_v31 = vpop.permute.xlu1 %81  ;;  %v80_v32 = vpop.permute.xlu0 %79  ;;  %v381_v22 = vrot.slane %v209_v58, 4  ;;  %v383_v33 = vrot.slane %v211_v61, 4  ;;  %v384_v49 = vrot.slane %v212_v16, 4 }
  0xaa   :  { %v92_v52 = vsel %vm89_vm2, %v80_v32, %v82_v31 }
  0xab   :  { %v111_v62 = vmul.f32 %v1965_v36, %v92_v52 }
  0xad   :  { %v86_v46 = vpop.permute.xlu1 %85  ;;  %v84_v47 = vpop.permute.xlu0 %83  ;;  %v415_v40 = vsel %vm413_vm3, %v111_v62, %v370_v14  ;;  %v314_v14 = vsub.s32 7, %v1921_v12 }
  0xae   :  { %v93_v63 = vsel %vm89_vm2, %v86_v46, %v80_v32  ;;  %v90_v5 = vsel %vm89_vm2, %v84_v47, %v86_v46  ;;  %v91_v10 = vsel %vm89_vm2, %v82_v31, %v84_v47 }
  0xaf   :  { %v110_v24 = vmul.f32 %v1972_v39, %v93_v63  ;;  %v113_v32 = vmul.f32 %v1982_v43, %v90_v5  ;;  %v112_v37 = vmul.f32 %v1979_v42, %v91_v10  ;;  %v215_v10 = vsub.s32 4, %v1921_v12 }
  0xb1   :  { %v150_v6 = vpop.permute.xlu1 %149  ;;  %v148_v7 = vpop.permute.xlu0 %147  ;;  %v414_v53 = vsel %vm413_vm3, %v110_v24, %v369_v8  ;;  %v417_v54 = vsel %vm413_vm3, %v113_v32, %v372_v9  ;;  %v416_v62 = vsel %vm413_vm3, %v112_v37, %v371_v21  ;;  %v2052_v16 = vrot.slane %v1931_v20, %v215_v10 }
  0xb2   :  { %v158_v11 = vsel %vm155_vm4, %v148_v7, %v150_v6  ;;  %v281_v37 = vsub.s32 6, %v1921_v12 }
  0xb3   :  { %v177_v17 = vmul.f32 %v1990_v48, %v158_v11  ;;  %v248_v11 = vsub.s32 5, %v1921_v12  ;;  %2757 = vst [vmem:[#allocation12_spill] sm:$0xff] %v2052_v16 }
  0xb4   :  { %v2156_v4 = vrot.slane %v1933_v23, %v281_v37 }
  0xb5   :  { %v154_v38 = vpop.permute.xlu1 %153  ;;  %v152_v31 = vpop.permute.xlu0 %151  ;;  %v419_v41 = vsel %vm413_vm3, %v177_v17, %v382_v13  ;;  %v2048_v13 = vrot.slane %v1927_v18, %v215_v10  ;;  %v2059_v24 = vrot.slane %v1929_v19, %v248_v11  ;;  %v2062_v32 = vrot.slane %v1931_v20, %v248_v11 }
  0xb6   :  { %v159_v44 = vsel %vm155_vm4, %v154_v38, %v148_v7  ;;  %v156_v45 = vsel %vm155_vm4, %v152_v31, %v154_v38  ;;  %v157_v46 = vsel %vm155_vm4, %v150_v6, %v152_v31  ;;  %v1593_v47 = vpack.c.bf16 %v419_v41, %v415_v40 }
  0xb7   :  { %v176_v50 = vmul.f32 %v2001_v55, %v159_v44  ;;  %v178_v51 = vmul.f32 %v2004_v56, %v157_v46  ;;  %v179_v52 = vmul.f32 %v2011_v60, %v156_v45  ;;  %2756 = vst [vmem:[#allocation11_spill] sm:$0xff] %v2048_v13  ;;  %2758 = vst [vmem:[#allocation13_spill] sm:$0xff] %v2059_v24 }
  0xb8   :  { %1594 = vmatprep.subr.bf16.mxu0 %v1593_v47  ;;  %v229_v38 = vmul.f32 %v2048_v13, %v1842_v1  ;;  %v2072_v31 = vrot.slane %v1927_v18, %v314_v14  ;;  %v230_v40 = vmul.f32 %v2052_v16, %v1858_v3  ;;  %v2077_v41 = vrot.slane %v1929_v19, %v215_v10 }
  0xb9   :  { %v236_v57 = vpop.permute.xlu1 %235  ;;  %v234_v58 = vpop.permute.xlu0 %233  ;;  %v418_v59 = vsel %vm413_vm3, %v176_v50, %v381_v22  ;;  %v421_v61 = vsel %vm413_vm3, %v179_v52, %v384_v49  ;;  %v420_v63 = vsel %vm413_vm3, %v178_v51, %v383_v33  ;;  %v2056_v22 = vrot.slane %v1927_v18, %v248_v11 }
  0xba   :  { %v1595_v5 = vpack.c.bf16 %v418_v59, %v414_v53  ;;  %v1601_v6 = vpack.c.bf16 %v421_v61, %v417_v54  ;;  %v1603_v7 = vpack.c.bf16 %v420_v63, %v416_v62  ;;  %v2065_v33 = vrot.slane %v1933_v23, %v248_v11  ;;  %2760 = vst [vmem:[#allocation15_spill] sm:$0xff] %v2072_v31 }
  0xbb   :  { %2761 = vst [vmem:[#allocation16_spill] sm:$0xff] %v2077_v41  ;;  %v2080_v44 = vrot.slane %v1933_v23, %v215_v10  ;;  %v2084_v45 = vsel %vm241_vm5, %v234_v58, %v236_v57  ;;  %v2095_v47 = vrot.slane %v1929_v19, %v314_v14  ;;  %v2110_v54 = vrot.slane %v1931_v20, %v314_v14 }
  0xbc   :  { %1596 = vmatpush1.bf16.msra.mxu0 %v1595_v5  ;;  %1602 = vmatprep.subr.bf16.mxu1 %v1601_v6  ;;  %2759 = vst [vmem:[#allocation14_spill] sm:$0xff] %v2065_v33  ;;  %v2121_v59 = vrot.slane %v1927_v18, %v281_v37  ;;  %v262_v61 = vmul.f32 %v2056_v22, %v2084_v45 }
  0xbd   :  { %v240_v8 = vpop.permute.xlu1 %239  ;;  %1604 = vmatpush1.bf16.msra.mxu1 %v1603_v7  ;;  %v238_v9 = vpop.permute.xlu0 %237  ;;  %2762 = vst [vmem:[#allocation17_spill] sm:$0xff] %v2080_v44  ;;  %2763 = vst [vmem:[#allocation18_spill] sm:$0xff] %v2095_v47 }
  0xbe   :  { %v2088_v12 = vsel %vm241_vm5, %v240_v8, %v234_v58  ;;  %v2092_v46 = vsel %vm241_vm5, %v236_v57, %v238_v9  ;;  %v2099_v51 = vsel %vm241_vm5, %v238_v9, %v240_v8  ;;  %2764 = vst [vmem:[#allocation19_spill] sm:$0xff] %v2110_v54  ;;  %v2113_v57 = vrot.slane %v1933_v23, %v314_v14 }
  0xbf   :  { %v265_v62 = vmul.f32 %v2059_v24, %v2088_v12  ;;  %v263_v63 = vmul.f32 %v2062_v32, %v2092_v46  ;;  %v264_v6 = vmul.f32 %v2065_v33, %v2099_v51  ;;  %v232_v9 = vmul.f32 %v2077_v41, %v1850_v2 }
  0xc0   :  { %2765 = vst [vmem:[#allocation20_spill] sm:$0xff] %v2113_v57  ;;  %v393_v41 = vrot.slane %v262_v61, 4  ;;  %v1363_v24 = vrot.slane %v2084_v45, 4 }
  0xc1   :  { %v302_v17 = vpop.permute.xlu1 %301  ;;  %v300_v21 = vpop.permute.xlu0 %299  ;;  %v394_v16 = vrot.slane %v263_v63, 4  ;;  %v395_v33 = vrot.slane %v264_v6, 4 }
  0xc2   :  { %v2103_v52 = vsel %vm307_vm6, %v300_v21, %v302_v17 }
  0xc3   :  { %v328_v18 = vmul.f32 %v2072_v31, %v2103_v52  ;;  %v423_v6 = vsel %vm413_vm3, %v230_v40, %v394_v16 }
  0xc5   :  { %v306_v49 = vpop.permute.xlu1 %305  ;;  %v304_v50 = vpop.permute.xlu0 %303 }
  0xc6   :  { %v2107_v53 = vsel %vm307_vm6, %v306_v49, %v300_v21  ;;  %v2117_v58 = vsel %vm307_vm6, %v302_v17, %v304_v50  ;;  %v2131_v5 = vsel %vm307_vm6, %v304_v50, %v306_v49  ;;  %v2146_v17 = vrot.slane %v1929_v19, %v281_v37 }
  0xc7   :  { %v331_v7 = vmul.f32 %v2095_v47, %v2107_v53  ;;  %v329_v11 = vmul.f32 %v2110_v54, %v2117_v58  ;;  %v231_v21 = vmul.f32 %v1837_v0, %v2080_v44  ;;  %v330_v49 = vmul.f32 %v2113_v57, %v2131_v5 }
  0xc8   :  { %v2153_v50 = vrot.slane %v1931_v20, %v281_v37  ;;  %v396_v47 = vrot.slane %v265_v62, 4  ;;  %v405_v44 = vrot.slane %v328_v18, 4 }
  0xc9   :  { %v269_v10 = vpop.permute.xlu1 %268  ;;  %v267_v8 = vpop.permute.xlu0 %266  ;;  %v408_v13 = vrot.slane %v331_v7, 4  ;;  %v406_v31 = vrot.slane %v329_v11, 4  ;;  %v407_v61 = vrot.slane %v330_v49, 4  ;;  %v422_v7 = vsel %vm413_vm3, %v229_v38, %v393_v41  ;;  %v2180_v38 = vld [vmem:[#allocation2 + $0x38] ss:$0 sm:$0xff] }
  0xca   :  { %v277_v14 = vsel %vm274_vm7, %v267_v8, %v269_v10  ;;  %v425_v18 = vsel %vm413_vm3, %v232_v9, %v396_v47 }
  0xcb   :  { %v295_v19 = vmul.f32 %v2121_v59, %v277_v14 }
  0xcd   :  { %v273_v54 = vpop.permute.xlu1 %272  ;;  %v271_v57 = vpop.permute.xlu0 %270 }
  0xce   :  { %v278_v20 = vsel %vm274_vm7, %v273_v54, %v267_v8  ;;  %v275_v23 = vsel %vm274_vm7, %v271_v57, %v273_v54  ;;  %v276_v37 = vsel %vm274_vm7, %v269_v10, %v271_v57  ;;  %v426_v8 = vsel %vm413_vm3, %v295_v19, %v405_v44 }
  0xcf   :  { %v298_v62 = vmul.f32 %v2146_v17, %v278_v20  ;;  %v296_v45 = vmul.f32 %v2153_v50, %v276_v37  ;;  %v297_v63 = vmul.f32 %v2156_v4, %v275_v23  ;;  %v424_v10 = vsel %vm413_vm3, %v231_v21, %v395_v33  ;;  %v2193_v23 = vld [vmem:[#allocation2 + $0x20] ss:$0 sm:$0xff] }
  0xd0   :  { %v1599_v41 = vpack.c.bf16 %v426_v8, %v422_v7  ;;  %v1366_v44 = vrot.slane %v2088_v12, 4  ;;  %v2189_v33 = vsel %vm413_vm3, %v1842_v1, %v1363_v24  ;;  %v1364_v21 = vrot.slane %v2092_v46, 4  ;;  %v430_v8 = vld [vmem:[#allocation5] sm:$0xf] }
  0xd1   :  { %v335_v11 = vpop.permute.xlu1 %334  ;;  %v333_v54 = vpop.permute.xlu0 %332  ;;  %v427_v14 = vsel %vm413_vm3, %v296_v45, %v406_v31  ;;  %v429_v57 = vsel %vm413_vm3, %v298_v62, %v408_v13  ;;  %v428_v49 = vsel %vm413_vm3, %v297_v63, %v407_v61  ;;  %v2183_v31 = vld [vmem:[#allocation2 + $0x28] ss:$0 sm:$0xff]  ;;  %v2185_v13 = vld [vmem:[#allocation2 + $0x30] ss:$0 sm:$0xff]  ;;  %2766 = vst [vmem:[#allocation21_spill] sm:$0xff] %v2189_v33  ;;  %v1365_v19 = vrot.slane %v2099_v51, 4 }
  0xd2   :  { %v343_v20 = vsel %vm340_vm8, %v333_v54, %v335_v11  ;;  %v1597_v16 = vpack.c.bf16 %v427_v14, %v423_v6  ;;  %v1605_v40 = vpack.c.bf16 %v429_v57, %v425_v18  ;;  %v1607_v47 = vpack.c.bf16 %v428_v49, %v424_v10 }
  0xd3   :  { %v1375_v9 = vrot.slane %v343_v20, 4  ;;  %v361_v6 = vmul.f32 %v2193_v23, %v343_v20  ;;  %v2223_v14 = vsel %vm413_vm3, %v1858_v3, %v1364_v21  ;;  %v2774_v10 = vmov 0.0  }
  0xd4   :  { %1598 = vmatprep.subr.bf16.mxu0 %v1597_v16  ;;  %1606 = vmatprep.subr.bf16.mxu1 %v1605_v40  ;;  %2770 = vst [vmem:[#allocation25_spill] sm:$0xff] %v2223_v14 }
  0xd5   :  { %v2197_v12 = vsel %vm413_vm3, %v2103_v52, %v1375_v9  ;;  %v339_v37 = vpop.permute.xlu1 %338  ;;  %1608 = vmatpush1.bf16.msra.mxu1 %v1607_v47  ;;  %v337_v61 = vpop.permute.xlu0 %336  ;;  %1600 = vmatpush1.bf16.msra.mxu0 %v1599_v41 }
  0xd6   :  { %2767 = vst [vmem:[#allocation22_spill] sm:$0xff] %v2197_v12  ;;  %v344_v62 = vsel %vm340_vm8, %v339_v37, %v333_v54  ;;  %v341_v1 = vsel %vm340_vm8, %v337_v61, %v339_v37  ;;  %v342_v24 = vsel %vm340_vm8, %v335_v11, %v337_v61  ;;  %v2213_v54 = vsel %vm413_vm3, %v1850_v2, %v1366_v44 }
  0xd7   :  { %v364_v51 = vmul.f32 %v2180_v38, %v344_v62  ;;  %v1378_v52 = vrot.slane %v344_v62, 4  ;;  %v362_v45 = vmul.f32 %v2183_v31, %v342_v24  ;;  %v363_v63 = vmul.f32 %v2185_v13, %v341_v1  ;;  %2768 = vst [vmem:[#allocation23_spill] sm:$0xff] %v2213_v54  ;;  %v796_v62 = vld [vmem:[%s2720_s5] sm:$0xf] }
  0xd8   :  { %v1376_v18 = vrot.slane %v342_v24, 4  ;;  %v1377_v7 = vrot.slane %v341_v1, 4  ;;  %v2217_v11 = vsel %vm413_vm3, %v1837_v0, %v1365_v19 }
  0xd9   :  { %2769 = vst [vmem:[#allocation24_spill] sm:$0xff] %v2217_v11  ;;  %1573 = vmatprep.subr.msk.mxu0 %vm413_vm3, %v362_v45  ;;  %1576 = vmatprep.subr.msk.mxu1 %vm413_vm3, %v364_v51  ;;  %v2227_v57 = vsel %vm413_vm3, %v2107_v53, %v1378_v52 }
  0xda   :  { %2771 = vst [vmem:[#allocation26_spill] sm:$0xff] %v2227_v57  ;;  %v2231_v2 = vsel %vm413_vm3, %v2131_v5, %v1377_v7  ;;  %1574 = vmatpush1.msk.msra.mxu0 %vm413_vm3, %v361_v6  ;;  %1577 = vmatpush1.msk.msra.mxu1 %vm413_vm3, %v363_v63  ;;  %v2237_v0 = vsel %vm413_vm3, %v2117_v58, %v1376_v18 }
  0xdb   :  { %2772 = vst [vmem:[#allocation27_spill] sm:$0xff] %v2231_v2  ;;  %2773 = vst [vmem:[#allocation28_spill] sm:$0xff] %v2237_v0  ;;  %1575 = vmatmul.mubr.msk.f32.vlgmr.msra.gmra.mrb[0].mxu0 %vm437_vm9, %v430_v8  ;;  %1578 = vmatmul.mubr.msk.f32.vlgmr.msra.gmra.mrb[0].mxu1 %vm437_vm9, %v430_v8 }
  0xdc   :  { %881 = vmatprep.mubr.f32.mxu0 %v2774_v10  ;;  %952 = vmatprep.mubr.f32.mxu1 %v2774_v10 }
  0xe6   :  { %v435_v49 = vpop.permute.xlu0 %434 }
 0x1ae   :  { %v590_v58 = vpop.f32.mrb[0].mxu1  ;;  %v519_v20 = vpop.f32.mrb[0].mxu0 }
 0x1af   :  { %v591_v16 = vadd.f32 %v590_v58, %v435_v49  ;;  %v520_v40 = vadd.f32 %v519_v20, %v435_v49  ;;  %v521_v47 = vpop.f32.mrb[1].mxu0  ;;  %v592_v9 = vpop.f32.mrb[1].mxu1 }
 0x1b0   :  { %v522_v21 = vadd.f32 %v521_v47, %v435_v49  ;;  %v593_v37 = vadd.f32 %v592_v9, %v435_v49 }
 0x1b1   :  { %v2249_v41 = vmax.f32 %v591_v16, 0.0  ;;  %v2251_v44 = vmax.f32 %v520_v40, 0.0 }
 0x1b2   :  { %v2257_v19 = vmax.f32 %v522_v21, 0.0  ;;  %v2263_v61 = vmax.f32 %v593_v37, 0.0 }
 0x1b3   :  { %619 = vrot.lane.b32.xlu0 %v2249_v41, %s1744_s22  ;;  %615 = vrot.lane.b32.xlu1 %v2251_v44, %s1744_s22 }
 0x1b7   :  { %647 = vrot.lane.b32.xlu0 %v2251_v44, %s1745_s2  ;;  %617 = vrot.lane.b32.xlu1 %v2257_v19, %s1744_s22 }
 0x1bb   :  { %651 = vrot.lane.b32.xlu0 %v2249_v41, %s1745_s2  ;;  %621 = vrot.lane.b32.xlu1 %v2263_v61, %s1744_s22 }
 0x1bf   :  { %599 = vrot.lane.b32.xlu0 %v2251_v44, %s1746_s0  ;;  %649 = vrot.lane.b32.xlu1 %v2257_v19, %s1745_s2 }
 0x1c3   :  { %603 = vrot.lane.b32.xlu0 %v2249_v41, %s1746_s0  ;;  %653 = vrot.lane.b32.xlu1 %v2263_v61, %s1745_s2 }
 0x1c7   :  { %631 = vrot.lane.b32.xlu0 %v2251_v44, %s1747_s23  ;;  %601 = vrot.lane.b32.xlu1 %v2257_v19, %s1746_s0 }
 0x1cb   :  { %635 = vrot.lane.b32.xlu0 %v2249_v41, %s1747_s23  ;;  %605 = vrot.lane.b32.xlu1 %v2263_v61, %s1746_s0 }
 0x1cf   :  { %667 = vrot.lane.b32.xlu0 %v2251_v44, %s1748_s24  ;;  %633 = vrot.lane.b32.xlu1 %v2257_v19, %s1747_s23 }
 0x1d3   :  { %671 = vrot.lane.b32.xlu0 %v2249_v41, %s1748_s24  ;;  %637 = vrot.lane.b32.xlu1 %v2263_v61, %s1747_s23 }
 0x1d7   :  { %699 = vrot.lane.b32.xlu0 %v2251_v44, %s1749_s25  ;;  %669 = vrot.lane.b32.xlu1 %v2257_v19, %s1748_s24 }
 0x1db   :  { %703 = vrot.lane.b32.xlu0 %v2249_v41, %s1749_s25  ;;  %673 = vrot.lane.b32.xlu1 %v2263_v61, %s1748_s24 }
 0x1df   :  { %683 = vrot.lane.b32.xlu0 %v2251_v44, %s1750_s26  ;;  %701 = vrot.lane.b32.xlu1 %v2257_v19, %s1749_s25 }
 0x1e3   :  { %687 = vrot.lane.b32.xlu0 %v2249_v41, %s1750_s26  ;;  %705 = vrot.lane.b32.xlu1 %v2263_v61, %s1749_s25 }
 0x1e7   :  { %715 = vrot.lane.b32.xlu0 %v2251_v44, %s1753_s27  ;;  %685 = vrot.lane.b32.xlu1 %v2257_v19, %s1750_s26 }
 0x1eb   :  { %719 = vrot.lane.b32.xlu0 %v2249_v41, %s1753_s27  ;;  %689 = vrot.lane.b32.xlu1 %v2263_v61, %s1750_s26 }
 0x1ef   :  { %799 = vperm.xlu0 %1664, %v796_v62   ;;  %717 = vrot.lane.b32.xlu1 %v2257_v19, %s1753_s27 }
 0x1f3   :  { %721 = vrot.lane.b32.xlu1 %v2263_v61, %s1753_s27 }
 0x225   :  { %v620_v1 = vpop.permute.xlu0 %619  ;;  %v616_v24 = vpop.permute.xlu1 %615 }
 0x229   :  { %v648_v51 = vpop.permute.xlu0 %647  ;;  %v618_v52 = vpop.permute.xlu1 %617 }
 0x22a   :  { %v625_v20 = vsel %vm122_vm0, %v616_v24, %v618_v52  ;;  %v624_v3 = vsel %vm122_vm0, %v618_v52, %v620_v1 }
 0x22b   :  { %v628_v47 = vmul.f32 %v625_v20, %v1948_v28 }
 0x22d   :  { %v652_v45 = vpop.permute.xlu0 %651  ;;  %v622_v63 = vpop.permute.xlu1 %621  ;;  %v736_v11 = vrot.slane %v628_v47, 4 }
 0x22e   :  { %v626_v40 = vsel %vm122_vm0, %v622_v63, %v616_v24  ;;  %v623_v9 = vsel %vm122_vm0, %v620_v1, %v622_v63 }
 0x22f   :  { %v627_v24 = vmul.f32 %v626_v40, %v1938_v25  ;;  %v630_v20 = vmul.f32 %v623_v9, %v1941_v26 }
 0x231   :  { %v600_v6 = vpop.permute.xlu0 %599  ;;  %v650_v18 = vpop.permute.xlu1 %649 }
 0x232   :  { %v657_v16 = vsel %vm188_vm1, %v648_v51, %v650_v18  ;;  %v656_v21 = vsel %vm188_vm1, %v650_v18, %v652_v45 }
 0x233   :  { %v660_v37 = vmul.f32 %v657_v16, %v1945_v27  ;;  %v661_v53 = vmul.f32 %v656_v21, %v1958_v34  ;;  %v629_v16 = vmul.f32 %v624_v3, %v1951_v29  ;;  %v735_v21 = vrot.slane %v627_v24, 4 }
 0x235   :  { %v604_v7 = vpop.permute.xlu0 %603  ;;  %v654_v8 = vpop.permute.xlu1 %653  ;;  %v748_v2 = vrot.slane %v660_v37, 4  ;;  %v738_v37 = vrot.slane %v630_v20, 4  ;;  %v749_v57 = vrot.slane %v661_v53, 4 }
 0x236   :  { %v655_v63 = vsel %vm188_vm1, %v652_v45, %v654_v8  ;;  %v658_v18 = vsel %vm188_vm1, %v654_v8, %v648_v51 }
 0x237   :  { %v659_v3 = vmul.f32 %v658_v18, %v1954_v30  ;;  %v662_v8 = vmul.f32 %v655_v63, %v1961_v35 }
 0x239   :  { %v632_v49 = vpop.permute.xlu0 %631  ;;  %v602_v58 = vpop.permute.xlu1 %601  ;;  %v747_v24 = vrot.slane %v659_v3, 4  ;;  %v750_v20 = vrot.slane %v662_v8, 4 }
 0x23a   :  { %v609_v46 = vsel %vm89_vm2, %v600_v6, %v602_v58 }
 0x23b   :  { %v612_v1 = vmul.f32 %v609_v46, %v1965_v36  ;;  %v608_v46 = vsel %vm89_vm2, %v602_v58, %v604_v7 }
 0x23c   :  { %v613_v14 = vmul.f32 %v608_v46, %v1979_v42 }
 0x23d   :  { %v636_v62 = vpop.permute.xlu0 %635  ;;  %v606_v5 = vpop.permute.xlu1 %605  ;;  %v780_v18 = vsel %vm413_vm3, %v612_v1, %v736_v11 }
 0x23e   :  { %v607_v40 = vsel %vm89_vm2, %v604_v7, %v606_v5  ;;  %v610_v9 = vsel %vm89_vm2, %v606_v5, %v600_v6 }
 0x23f   :  { %v611_v6 = vmul.f32 %v610_v9, %v1972_v39  ;;  %v614_v33 = vmul.f32 %v607_v40, %v1982_v43 }
 0x241   :  { %v668_v52 = vpop.permute.xlu0 %667  ;;  %v634_v54 = vpop.permute.xlu1 %633  ;;  %v782_v46 = vsel %vm413_vm3, %v614_v33, %v738_v37 }
 0x242   :  { %v640_v45 = vsel %vm155_vm4, %v634_v54, %v636_v62  ;;  %v641_v51 = vsel %vm155_vm4, %v632_v49, %v634_v54 }
 0x243   :  { %v644_v47 = vmul.f32 %v641_v51, %v1990_v48  ;;  %v645_v5 = vmul.f32 %v640_v45, %v2004_v56  ;;  %v737_v45 = vrot.slane %v629_v16, 4 }
 0x245   :  { %v672_v12 = vpop.permute.xlu0 %671  ;;  %v638_v54 = vpop.permute.xlu1 %637  ;;  %v784_v63 = vsel %vm413_vm3, %v644_v47, %v748_v2  ;;  %v785_v11 = vsel %vm413_vm3, %v645_v5, %v749_v57  ;;  %v779_v2 = vsel %vm413_vm3, %v611_v6, %v735_v21  ;;  %v781_v3 = vsel %vm413_vm3, %v613_v14, %v737_v45 }
 0x246   :  { %v639_v7 = vsel %vm155_vm4, %v636_v62, %v638_v54  ;;  %v642_v53 = vsel %vm155_vm4, %v638_v54, %v632_v49  ;;  %v1609_v58 = vpack.c.bf16 %v784_v63, %v780_v18  ;;  %v1619_v54 = vpack.c.bf16 %v785_v11, %v781_v3  ;;  %v2778_v3 = vld [vmem:[#allocation14_spill] sm:$0xff] }
 0x247   :  { %v643_v9 = vmul.f32 %v642_v53, %v2001_v55  ;;  %v646_v40 = vmul.f32 %v639_v7, %v2011_v60 }
 0x248   :  { %1610 = vmatprep.subr.bf16.mxu0 %v1609_v58 }
 0x249   :  { %v783_v1 = vsel %vm413_vm3, %v643_v9, %v747_v24  ;;  %v700_v51 = vpop.permute.xlu0 %699  ;;  %v670_v62 = vpop.permute.xlu1 %669  ;;  %v786_v49 = vsel %vm413_vm3, %v646_v40, %v750_v20  ;;  %v2775_v20 = vld [vmem:[#allocation15_spill] sm:$0xff] }
 0x24a   :  { %v1611_v8 = vpack.c.bf16 %v783_v1, %v779_v2  ;;  %v1617_v47 = vpack.c.bf16 %v786_v49, %v782_v46  ;;  %v676_v21 = vsel %vm241_vm5, %v670_v62, %v672_v12  ;;  %v677_v5 = vsel %vm241_vm5, %v668_v52, %v670_v62  ;;  %v2776_v40 = vld [vmem:[#allocation19_spill] sm:$0xff] }
 0x24b   :  { %v679_v18 = vmul.f32 %v677_v5, %v2056_v22  ;;  %v680_v63 = vmul.f32 %v676_v21, %v2062_v32  ;;  %v2777_v46 = vld [vmem:[#allocation11_spill] sm:$0xff] }
 0x24c   :  { %1612 = vmatpush1.bf16.msra.mxu0 %v1611_v8  ;;  %1618 = vmatprep.subr.bf16.mxu1 %v1617_v47  ;;  %v663_v49 = vmul.f32 %v2251_v44, %v2777_v46  ;;  %v2779_v8 = vld [vmem:[#allocation13_spill] sm:$0xff] }
 0x24d   :  { %v704_v16 = vpop.permute.xlu0 %703  ;;  %1620 = vmatpush1.bf16.msra.mxu1 %v1619_v54  ;;  %v674_v57 = vpop.permute.xlu1 %673  ;;  %v759_v11 = vrot.slane %v679_v18, 4  ;;  %v760_v2 = vrot.slane %v680_v63, 4  ;;  %v2780_v54 = vld [vmem:[#allocation12_spill] sm:$0xff] }
 0x24e   :  { %v675_v58 = vsel %vm241_vm5, %v672_v12, %v674_v57  ;;  %v678_v24 = vsel %vm241_vm5, %v674_v57, %v668_v52  ;;  %v664_v57 = vmul.f32 %v2257_v19, %v2780_v54  ;;  %v2783_v19 = vld [vmem:[#allocation17_spill] sm:$0xff] }
 0x24f   :  { %v681_v12 = vmul.f32 %v675_v58, %v2778_v3  ;;  %v682_v47 = vmul.f32 %v678_v24, %v2779_v8  ;;  %v787_v58 = vsel %vm413_vm3, %v663_v49, %v759_v11  ;;  %v665_v24 = vmul.f32 %v2249_v41, %v2783_v19 }
 0x251   :  { %v684_v6 = vpop.permute.xlu0 %683  ;;  %v702_v33 = vpop.permute.xlu1 %701  ;;  %v762_v54 = vrot.slane %v682_v47, 4 }
 0x252   :  { %v708_v37 = vsel %vm307_vm6, %v702_v33, %v704_v16  ;;  %v709_v14 = vsel %vm307_vm6, %v700_v51, %v702_v33 }
 0x253   :  { %v711_v9 = vmul.f32 %v709_v14, %v2775_v20  ;;  %v712_v45 = vmul.f32 %v708_v37, %v2776_v40  ;;  %v2782_v14 = vld [vmem:[#allocation18_spill] sm:$0xff] }
 0x255   :  { %v688_v7 = vpop.permute.xlu0 %687  ;;  %v706_v53 = vpop.permute.xlu1 %705  ;;  %v771_v21 = vrot.slane %v711_v9, 4  ;;  %v772_v5 = vrot.slane %v712_v45, 4  ;;  %v788_v9 = vsel %vm413_vm3, %v664_v57, %v760_v2  ;;  %v2784_v45 = vld [vmem:[#allocation16_spill] sm:$0xff] }
 0x256   :  { %v707_v1 = vsel %vm307_vm6, %v704_v16, %v706_v53  ;;  %v710_v62 = vsel %vm307_vm6, %v706_v53, %v700_v51  ;;  %v2781_v51 = vld [vmem:[#allocation20_spill] sm:$0xff]  ;;  %v666_v0 = vmul.f32 %v2263_v61, %v2784_v45 }
 0x257   :  { %v713_v37 = vmul.f32 %v707_v1, %v2781_v51  ;;  %v714_v44 = vmul.f32 %v710_v62, %v2782_v14 }
 0x259   :  { %v686_v52 = vpop.permute.xlu1 %685  ;;  %v716_v18 = vpop.permute.xlu0 %715  ;;  %v774_v2 = vrot.slane %v714_v44, 4 }
 0x25a   :  { %v692_v33 = vsel %vm274_vm7, %v686_v52, %v688_v7  ;;  %v693_v16 = vsel %vm274_vm7, %v684_v6, %v686_v52  ;;  %v761_v52 = vrot.slane %v681_v12, 4 }
 0x25b   :  { %v695_v63 = vmul.f32 %v693_v16, %v2121_v59  ;;  %v696_v53 = vmul.f32 %v692_v33, %v2153_v50  ;;  %v773_v16 = vrot.slane %v713_v37, 4 }
 0x25c   :  { %v789_v12 = vsel %vm413_vm3, %v665_v24, %v761_v52  ;;  %v795_v24 = vld [vmem:[%s2719_s4] sm:$0xf] }
 0x25d   :  { %v791_v1 = vsel %vm413_vm3, %v695_v63, %v771_v21  ;;  %v690_v62 = vpop.permute.xlu1 %689  ;;  %v792_v14 = vsel %vm413_vm3, %v696_v53, %v772_v5  ;;  %v720_v47 = vpop.permute.xlu0 %719 }
 0x25e   :  { %v691_v33 = vsel %vm274_vm7, %v688_v7, %v690_v62  ;;  %v694_v11 = vsel %vm274_vm7, %v690_v62, %v684_v6  ;;  %v1613_v49 = vpack.c.bf16 %v792_v14, %v788_v9  ;;  %v1615_v41 = vpack.c.bf16 %v791_v1, %v787_v58 }
 0x25f   :  { %v697_v57 = vmul.f32 %v691_v33, %v2156_v4  ;;  %v698_v61 = vmul.f32 %v694_v11, %v2146_v17  ;;  %v790_v7 = vsel %vm413_vm3, %v666_v0, %v762_v54 }
 0x260   :  { %1614 = vmatprep.subr.bf16.mxu0 %v1613_v49 }
 0x261   :  { %v793_v21 = vsel %vm413_vm3, %v697_v57, %v773_v16  ;;  %v718_v5 = vpop.permute.xlu1 %717  ;;  %1616 = vmatpush1.bf16.msra.mxu0 %v1615_v41  ;;  %v794_v6 = vsel %vm413_vm3, %v698_v61, %v774_v2 }
 0x262   :  { %v724_v37 = vsel %vm340_vm8, %v718_v5, %v720_v47  ;;  %v725_v14 = vsel %vm340_vm8, %v716_v18, %v718_v5  ;;  %v1621_v44 = vpack.c.bf16 %v794_v6, %v790_v7  ;;  %v1623_v63 = vpack.c.bf16 %v793_v21, %v789_v12  ;;  %v1160_v5 = vld [vmem:[%s2722_s7] sm:$0xff] }
 0x263   :  { %v727_v53 = vmul.f32 %v2193_v23, %v725_v14  ;;  %v728_v58 = vmul.f32 %v2183_v31, %v724_v37 }
 0x264   :  { %1622 = vmatprep.subr.bf16.mxu1 %v1621_v44 }
 0x265   :  { %1624 = vmatpush1.bf16.msra.mxu1 %v1623_v63  ;;  %v722_v0 = vpop.permute.xlu1 %721  ;;  %1579 = vmatprep.subr.msk.mxu0 %vm413_vm3, %v728_v58 }
 0x266   :  { %v723_v54 = vsel %vm340_vm8, %v720_v47, %v722_v0  ;;  %v726_v9 = vsel %vm340_vm8, %v722_v0, %v716_v18  ;;  %1580 = vmatpush1.msk.msra.mxu0 %vm413_vm3, %v727_v53 }
 0x267   :  { %v729_v52 = vmul.f32 %v2185_v13, %v723_v54  ;;  %v730_v1 = vmul.f32 %v2180_v38, %v726_v9  ;;  %1581 = vmatmul.mubr.msk.f32.vlgmr.msra.gmra.mrb[2].mxu0 %vm437_vm9, %v795_v24 }
 0x268   :  { %1245 = vmatprep.mubr.f32.mxu0 %v2774_v10 }
 0x269   :  { %1582 = vmatprep.subr.msk.mxu1 %vm413_vm3, %v730_v1 }
 0x26a   :  { %1583 = vmatpush1.msk.msra.mxu1 %vm413_vm3, %v729_v52 }
 0x26b   :  { %1584 = vmatmul.mubr.msk.f32.vlgmr.msra.gmra.mrb[2].mxu1 %vm437_vm9, %v795_v24 }
 0x26c   :  { %1316 = vmatprep.mubr.f32.mxu1 %v2774_v10 }
 0x26e   :  { %v800_v62 = vpop.permute.xlu0 %799 }
 0x33a   :  { %v883_v18 = vpop.f32.mrb[2].mxu0 }
 0x33b   :  { %v884_v33 = vadd.f32 %v883_v18, %v800_v62  ;;  %v885_v11 = vpop.f32.mrb[3].mxu0 }
 0x33c   :  { %v886_v49 = vadd.f32 %v885_v11, %v800_v62 }
 0x33d   :  { %v2455_v41 = vmax.f32 %v884_v33, 0.0 }
 0x33e   :  { %v2457_v16 = vmax.f32 %v886_v49, 0.0  ;;  %v954_v2 = vpop.f32.mrb[2].mxu1 }
 0x33f   :  { %v955_v57 = vadd.f32 %v954_v2, %v800_v62  ;;  %v956_v61 = vpop.f32.mrb[3].mxu1  ;;  %979 = vrot.lane.b32.xlu1 %v2455_v41, %s1744_s22 }
 0x340   :  { %v957_v12 = vadd.f32 %v956_v61, %v800_v62  ;;  %981 = vrot.lane.b32.xlu0 %v2457_v16, %s1744_s22 }
 0x341   :  { %v2463_v47 = vmax.f32 %v955_v57, 0.0 }
 0x342   :  { %v2465_v21 = vmax.f32 %v957_v12, 0.0 }
 0x343   :  { %983 = vrot.lane.b32.xlu1 %v2463_v47, %s1744_s22 }
 0x344   :  { %985 = vrot.lane.b32.xlu0 %v2465_v21, %s1744_s22 }
 0x347   :  { %1011 = vrot.lane.b32.xlu1 %v2455_v41, %s1745_s2 }
 0x348   :  { %1013 = vrot.lane.b32.xlu0 %v2457_v16, %s1745_s2 }
 0x34b   :  { %1015 = vrot.lane.b32.xlu1 %v2463_v47, %s1745_s2 }
 0x34c   :  { %1017 = vrot.lane.b32.xlu0 %v2465_v21, %s1745_s2 }
 0x34f   :  { %963 = vrot.lane.b32.xlu1 %v2455_v41, %s1746_s0 }
 0x350   :  { %965 = vrot.lane.b32.xlu0 %v2457_v16, %s1746_s0 }
 0x353   :  { %967 = vrot.lane.b32.xlu1 %v2463_v47, %s1746_s0 }
 0x354   :  { %969 = vrot.lane.b32.xlu0 %v2465_v21, %s1746_s0 }
 0x357   :  { %995 = vrot.lane.b32.xlu1 %v2455_v41, %s1747_s23 }
 0x358   :  { %997 = vrot.lane.b32.xlu0 %v2457_v16, %s1747_s23 }
 0x35b   :  { %999 = vrot.lane.b32.xlu1 %v2463_v47, %s1747_s23 }
 0x35c   :  { %1001 = vrot.lane.b32.xlu0 %v2465_v21, %s1747_s23 }
 0x35f   :  { %1031 = vrot.lane.b32.xlu1 %v2455_v41, %s1748_s24 }
 0x360   :  { %1033 = vrot.lane.b32.xlu0 %v2457_v16, %s1748_s24 }
 0x363   :  { %1035 = vrot.lane.b32.xlu1 %v2463_v47, %s1748_s24 }
 0x364   :  { %1037 = vrot.lane.b32.xlu0 %v2465_v21, %s1748_s24 }
 0x367   :  { %1063 = vrot.lane.b32.xlu1 %v2455_v41, %s1749_s25 }
 0x368   :  { %1065 = vrot.lane.b32.xlu0 %v2457_v16, %s1749_s25 }
 0x36b   :  { %1067 = vrot.lane.b32.xlu1 %v2463_v47, %s1749_s25 }
 0x36c   :  { %1069 = vrot.lane.b32.xlu0 %v2465_v21, %s1749_s25 }
 0x36f   :  { %1047 = vrot.lane.b32.xlu1 %v2455_v41, %s1750_s26 }
 0x370   :  { %1049 = vrot.lane.b32.xlu0 %v2457_v16, %s1750_s26 }
 0x373   :  { %1051 = vrot.lane.b32.xlu1 %v2463_v47, %s1750_s26 }
 0x374   :  { %1053 = vrot.lane.b32.xlu0 %v2465_v21, %s1750_s26 }
 0x377   :  { %1079 = vrot.lane.b32.xlu1 %v2455_v41, %s1753_s27 }
 0x378   :  { %1081 = vrot.lane.b32.xlu0 %v2457_v16, %s1753_s27 }
 0x37b   :  { %1083 = vrot.lane.b32.xlu1 %v2463_v47, %s1753_s27 }
 0x37c   :  { %1085 = vrot.lane.b32.xlu0 %v2465_v21, %s1753_s27 }
 0x37f   :  { %1163 = vperm.xlu1 %1665, %v1160_v5  }
 0x3b1   :  { %v980_v7 = vpop.permute.xlu1 %979 }
 0x3b2   :  { %v982_v6 = vpop.permute.xlu0 %981 }
 0x3b3   :  { %v989_v54 = vsel %vm122_vm0, %v980_v7, %v982_v6 }
 0x3b4   :  { %v992_v18 = vmul.f32 %v989_v54, %v1948_v28 }
 0x3b5   :  { %v984_v37 = vpop.permute.xlu1 %983 }
 0x3b6   :  { %v986_v14 = vpop.permute.xlu0 %985  ;;  %v988_v2 = vsel %vm122_vm0, %v982_v6, %v984_v37  ;;  %v1100_v54 = vrot.slane %v992_v18, 4 }
 0x3b7   :  { %v990_v9 = vsel %vm122_vm0, %v986_v14, %v980_v7  ;;  %v987_v52 = vsel %vm122_vm0, %v984_v37, %v986_v14  ;;  %v993_v6 = vmul.f32 %v988_v2, %v1951_v29 }
 0x3b8   :  { %v991_v57 = vmul.f32 %v990_v9, %v1938_v25  ;;  %v994_v61 = vmul.f32 %v987_v52, %v1941_v26 }
 0x3b9   :  { %v1012_v44 = vpop.permute.xlu1 %1011 }
 0x3ba   :  { %v1014_v63 = vpop.permute.xlu0 %1013  ;;  %v1099_v37 = vrot.slane %v991_v57, 4  ;;  %v1102_v9 = vrot.slane %v994_v61, 4  ;;  %v1101_v61 = vrot.slane %v993_v6, 4 }
 0x3bb   :  { %v1021_v1 = vsel %vm188_vm1, %v1012_v44, %v1014_v63 }
 0x3bc   :  { %v1024_v12 = vmul.f32 %v1021_v1, %v1945_v27 }
 0x3bd   :  { %v1016_v53 = vpop.permute.xlu1 %1015 }
 0x3be   :  { %v1018_v58 = vpop.permute.xlu0 %1017  ;;  %v1020_v33 = vsel %vm188_vm1, %v1014_v63, %v1016_v53 }
 0x3bf   :  { %v1025_v5 = vmul.f32 %v1020_v33, %v1958_v34  ;;  %v1019_v28 = vsel %vm188_vm1, %v1016_v53, %v1018_v58  ;;  %v1022_v7 = vsel %vm188_vm1, %v1018_v58, %v1012_v44  ;;  %v1112_v53 = vrot.slane %v1024_v12, 4 }
 0x3c0   :  { %v1026_v58 = vmul.f32 %v1019_v28, %v1961_v35 }
 0x3c1   :  { %v964_v24 = vpop.permute.xlu1 %963 }
 0x3c2   :  { %v966_v0 = vpop.permute.xlu0 %965  ;;  %v1114_v57 = vrot.slane %v1026_v58, 4 }
 0x3c3   :  { %v973_v11 = vsel %vm89_vm2, %v964_v24, %v966_v0 }
 0x3c4   :  { %v976_v14 = vmul.f32 %v973_v11, %v1965_v36  ;;  %v1023_v36 = vmul.f32 %v1022_v7, %v1954_v30 }
 0x3c5   :  { %v968_v62 = vpop.permute.xlu1 %967 }
 0x3c6   :  { %v970_v49 = vpop.permute.xlu0 %969  ;;  %v972_v25 = vsel %vm89_vm2, %v966_v0, %v968_v62  ;;  %v1113_v0 = vrot.slane %v1025_v5, 4  ;;  %v1111_v2 = vrot.slane %v1023_v36, 4 }
 0x3c7   :  { %v971_v27 = vsel %vm89_vm2, %v968_v62, %v970_v49  ;;  %v974_v34 = vsel %vm89_vm2, %v970_v49, %v964_v24  ;;  %v977_v52 = vmul.f32 %v972_v25, %v1979_v42  ;;  %v1144_v62 = vsel %vm413_vm3, %v976_v14, %v1100_v54 }
 0x3c8   :  { %v975_v18 = vmul.f32 %v974_v34, %v1972_v39  ;;  %v978_v24 = vmul.f32 %v971_v27, %v1982_v43 }
 0x3c9   :  { %v996_v63 = vpop.permute.xlu1 %995  ;;  %v1145_v54 = vsel %vm413_vm3, %v977_v52, %v1101_v61 }
 0x3ca   :  { %v998_v26 = vpop.permute.xlu0 %997  ;;  %v1146_v14 = vsel %vm413_vm3, %v978_v24, %v1102_v9 }
 0x3cb   :  { %v1005_v44 = vsel %vm155_vm4, %v996_v63, %v998_v26 }
 0x3cc   :  { %v1008_v29 = vmul.f32 %v1005_v44, %v1990_v48 }
 0x3cd   :  { %v1000_v1 = vpop.permute.xlu1 %999 }
 0x3ce   :  { %v1004_v33 = vsel %vm155_vm4, %v998_v26, %v1000_v1  ;;  %v1002_v11 = vpop.permute.xlu0 %1001  ;;  %v1148_v30 = vsel %vm413_vm3, %v1008_v29, %v1112_v53 }
 0x3cf   :  { %v1009_v35 = vmul.f32 %v1004_v33, %v2004_v56  ;;  %v1003_v48 = vsel %vm155_vm4, %v1000_v1, %v1002_v11  ;;  %v1006_v42 = vsel %vm155_vm4, %v1002_v11, %v996_v63  ;;  %v1625_v49 = vpack.c.bf16 %v1148_v30, %v1144_v62 }
 0x3d0   :  { %v1007_v39 = vmul.f32 %v1006_v42, %v2001_v55  ;;  %v1010_v43 = vmul.f32 %v1003_v48, %v2011_v60  ;;  %v1143_v56 = vsel %vm413_vm3, %v975_v18, %v1099_v37  ;;  %v1027_v42 = vmul.f32 %v2455_v41, %v2777_v46 }
 0x3d1   :  { %v1149_v12 = vsel %vm413_vm3, %v1009_v35, %v1113_v0  ;;  %1626 = vmatprep.subr.bf16.mxu0 %v1625_v49  ;;  %v1032_v5 = vpop.permute.xlu1 %1031  ;;  %v2785_v49 = vld [vmem:[#allocation18_spill] sm:$0xff]  ;;  %v1030_v46 = vmul.f32 %v2465_v21, %v2784_v45 }
 0x3d2   :  { %v1147_v28 = vsel %vm413_vm3, %v1007_v39, %v1111_v2  ;;  %v1034_v7 = vpop.permute.xlu0 %1033  ;;  %v1150_v63 = vsel %vm413_vm3, %v1010_v43, %v1114_v57  ;;  %v1635_v26 = vpack.c.bf16 %v1149_v12, %v1145_v54  ;;  %v2786_v57 = vld [vmem:[#allocation12_spill] sm:$0xff] }
 0x3d3   :  { %v1627_v25 = vpack.c.bf16 %v1147_v28, %v1143_v56  ;;  %v1633_v55 = vpack.c.bf16 %v1150_v63, %v1146_v14  ;;  %v1041_v44 = vsel %vm241_vm5, %v1032_v5, %v1034_v7 }
 0x3d4   :  { %v1043_v1 = vmul.f32 %v1041_v44, %v2056_v22 }
 0x3d5   :  { %1628 = vmatpush1.bf16.msra.mxu0 %v1627_v25  ;;  %1634 = vmatprep.subr.bf16.mxu1 %v1633_v55  ;;  %v1036_v60 = vpop.permute.xlu1 %1035 }
 0x3d6   :  { %v1038_v6 = vpop.permute.xlu0 %1037  ;;  %1636 = vmatpush1.bf16.msra.mxu1 %v1635_v26  ;;  %v1040_v53 = vsel %vm241_vm5, %v1034_v7, %v1036_v60 }
 0x3d7   :  { %v1039_v36 = vsel %vm241_vm5, %v1036_v60, %v1038_v6  ;;  %v1042_v29 = vsel %vm241_vm5, %v1038_v6, %v1032_v5  ;;  %v1044_v62 = vmul.f32 %v1040_v53, %v2062_v32 }
 0x3d8   :  { %v1045_v18 = vmul.f32 %v1039_v36, %v2778_v3  ;;  %v1046_v11 = vmul.f32 %v1042_v29, %v2779_v8  ;;  %v1029_v3 = vmul.f32 %v2463_v47, %v2783_v19 }
 0x3d9   :  { %v1064_v27 = vpop.permute.xlu1 %1063  ;;  %v1124_v39 = vrot.slane %v1044_v62, 4  ;;  %v1159_v62 = vld [vmem:[%s2721_s6] sm:$0xff] }
 0x3da   :  { %v1066_v34 = vpop.permute.xlu0 %1065  ;;  %v1125_v43 = vrot.slane %v1045_v18, 4 }
 0x3db   :  { %v1073_v9 = vsel %vm307_vm6, %v1064_v27, %v1066_v34 }
 0x3dc   :  { %v1075_v30 = vmul.f32 %v1073_v9, %v2775_v20  ;;  %v1028_v20 = vmul.f32 %v2457_v16, %v2786_v57  ;;  %v1153_v63 = vsel %vm413_vm3, %v1029_v3, %v1125_v43 }
 0x3dd   :  { %v1068_v37 = vpop.permute.xlu1 %1067 }
 0x3de   :  { %v1070_v58 = vpop.permute.xlu0 %1069  ;;  %v1072_v0 = vsel %vm307_vm6, %v1066_v34, %v1068_v37  ;;  %v1135_v41 = vrot.slane %v1075_v30, 4 }
 0x3df   :  { %v1071_v52 = vsel %vm307_vm6, %v1068_v37, %v1070_v58  ;;  %v1074_v24 = vsel %vm307_vm6, %v1070_v58, %v1064_v27  ;;  %v1076_v35 = vmul.f32 %v1072_v0, %v2776_v40  ;;  %v1123_v40 = vrot.slane %v1043_v1, 4 }
 0x3e0   :  { %v1077_v22 = vmul.f32 %v1071_v52, %v2781_v51  ;;  %v1078_v2 = vmul.f32 %v1074_v24, %v2785_v49  ;;  %v1126_v51 = vrot.slane %v1046_v11, 4  ;;  %v2794_v11 = vld [vmem:[#allocation23_spill] sm:$0xff] }
 0x3e1   :  { %v1048_v33 = vpop.permute.xlu1 %1047  ;;  %v1136_v12 = vrot.slane %v1076_v35, 4  ;;  %v1151_v14 = vsel %vm413_vm3, %v1027_v42, %v1123_v40  ;;  %v1391_v35 = vld [vmem:[%s2723_s8] sm:$0xff]  ;;  %v2797_v42 = vld [vmem:[#allocation24_spill] sm:$0xff] }
 0x3e2   :  { %v1050_v48 = vpop.permute.xlu0 %1049  ;;  %v1137_v5 = vrot.slane %v1077_v22, 4  ;;  %v1138_v28 = vrot.slane %v1078_v2, 4  ;;  %v1154_v6 = vsel %vm413_vm3, %v1030_v46, %v1126_v51 }
 0x3e3   :  { %v1057_v32 = vsel %vm274_vm7, %v1048_v33, %v1050_v48 }
 0x3e4   :  { %v1059_v8 = vmul.f32 %v1057_v32, %v2121_v59 }
 0x3e5   :  { %v1052_v61 = vpop.permute.xlu1 %1051 }
 0x3e6   :  { %v1056_v19 = vsel %vm274_vm7, %v1050_v48, %v1052_v61  ;;  %v1054_v47 = vpop.permute.xlu0 %1053  ;;  %v1155_v7 = vsel %vm413_vm3, %v1059_v8, %v1135_v41  ;;  %v2796_v48 = vld [vmem:[#allocation27_spill] sm:$0xff] }
 0x3e7   :  { %v1060_v59 = vmul.f32 %v1056_v19, %v2153_v50  ;;  %v1055_v16 = vsel %vm274_vm7, %v1052_v61, %v1054_v47  ;;  %v1058_v56 = vsel %vm274_vm7, %v1054_v47, %v1048_v33  ;;  %v1152_v50 = vsel %vm413_vm3, %v1028_v20, %v1124_v39  ;;  %v2793_v33 = vld [vmem:[#allocation26_spill] sm:$0xff] }
 0x3e8   :  { %v1061_v45 = vmul.f32 %v1055_v16, %v2156_v4  ;;  %v1062_v21 = vmul.f32 %v1058_v56, %v2146_v17  ;;  %v1631_v34 = vpack.c.bf16 %v1155_v7, %v1151_v14  ;;  %v2795_v30 = vpack.c.bf16 %v2793_v33, %v2794_v11  ;;  %v1392_v47 = vld [vmem:[%s2724_s9] sm:$0xff]  ;;  %s1754_s9 = smov [#allocation7]  }
 0x3e9   :  { %v1080_v54 = vpop.permute.xlu1 %1079  ;;  %v1156_v25 = vsel %vm413_vm3, %v1060_v59, %v1136_v12  ;;  %v2798_v22 = vpack.c.bf16 %v2796_v48, %v2797_v42  ;;  %s1558_s17 = sshll.u32 %s1754_s9, 4  ;;  %s1559_s17 = int_to_ptr.vmem [resolvable:$true] %s1558_s17 }
 0x3ea   :  { %v1157_v55 = vsel %vm413_vm3, %v1061_v45, %v1137_v5  ;;  %v1082_v26 = vpop.permute.xlu0 %1081  ;;  %v1629_v60 = vpack.c.bf16 %v1156_v25, %v1152_v50  ;;  %v1158_v27 = vsel %vm413_vm3, %v1062_v21, %v1138_v28  ;;  %s1712_s1 = scalar_lea.vmem %s1559_s17, 512  ;;  %p1717_p3 = scmp.lt.s32.totalorder %s1559_s17, %s1559_s17 }
 0x3eb   :  { %v1637_v4 = vpack.c.bf16 %v1158_v27, %v1154_v6  ;;  %v1639_v17 = vpack.c.bf16 %v1157_v55, %v1153_v63  ;;  %v1089_v37 = vsel %vm340_vm8, %v1080_v54, %v1082_v26  ;;  %p1713_p2 = scmp.ne.s32.totalorder %s1559_s17, %s1712_s1  ;;  %p1718_p4 = scmp.lt.s32.totalorder %s1712_s1, %s1712_s1 }
 0x3ec   :  { %1630 = vmatprep.subr.bf16.mxu0 %v1629_v60  ;;  %v1091_v0 = vmul.f32 %v2193_v23, %v1089_v37  ;;  %v2788_v23 = vld [vmem:[#allocation25_spill] sm:$0xff] }
 0x3ed   :  { %1638 = vmatprep.subr.bf16.mxu1 %v1637_v4  ;;  %v1084_v44 = vpop.permute.xlu1 %1083  ;;  %1632 = vmatpush1.bf16.msra.mxu0 %v1631_v34  ;;  %p1719_p5 = por %p1718_p4, %p1717_p3 }
 0x3ee   :  { %v1088_v53 = vsel %vm340_vm8, %v1082_v26, %v1084_v44  ;;  %v1086_v36 = vpop.permute.xlu0 %1085  ;;  %1640 = vmatpush1.bf16.msra.mxu1 %v1639_v17 }
 0x3ef   :  { %v1092_v58 = vmul.f32 %v2183_v31, %v1088_v53  ;;  %v1087_v29 = vsel %vm340_vm8, %v1084_v44, %v1086_v36  ;;  %v1090_v9 = vsel %vm340_vm8, %v1086_v36, %v1080_v54  ;;  %v2787_v31 = vld [vmem:[#allocation28_spill] sm:$0xff]  ;;  %p1720_p6 = pnand %p1719_p5, %p1713_p2 }
 0x3f0   :  { %v1093_v52 = vmul.f32 %v2185_v13, %v1087_v29  ;;  %v1094_v1 = vmul.f32 %v2180_v38, %v1090_v9  ;;  %v2789_v18 = vpack.c.bf16 %v2787_v31, %v2788_v23  ;;  %v2790_v38 = vld [vmem:[#allocation22_spill] sm:$0xff]  ;;  %v2791_v13 = vld [vmem:[#allocation21_spill] sm:$0xff] }
 0x3f1   :  { %1585 = vmatprep.subr.msk.mxu0 %vm413_vm3, %v1092_v58  ;;  %v2792_v24 = vpack.c.bf16 %v2790_v38, %v2791_v13 }
 0x3f2   :  { %1586 = vmatpush1.msk.msra.mxu0 %vm413_vm3, %v1091_v0  ;;  %1588 = vmatprep.subr.msk.mxu1 %vm413_vm3, %v1094_v1 }
 0x3f3   :  { %1587 = vmatmul.mubr.msk.f32.vlgmr.msra.gmra.mrb[4].mxu0 %vm437_vm9, %v1159_v62  ;;  %1589 = vmatpush1.msk.msra.mxu1 %vm413_vm3, %v1093_v52 }
 0x3f4   :  { %1642 = vmatprep.subr.bf16.mxu0 %v2789_v18  ;;  %1590 = vmatmul.mubr.msk.f32.vlgmr.msra.gmra.mrb[4].mxu1 %vm437_vm9, %v1159_v62 }
 0x3f5   :  { %1644 = vmatpush1.bf16.msra.mxu0 %v2792_v24  ;;  %1646 = vmatprep.subr.bf16.mxu1 %v2795_v30 }
 0x3f6   :  { %1648 = vmatpush1.bf16.msra.mxu1 %v2798_v22  ;;  %1466 = vmatprep.mubr.f32.mxu0 %v2774_v10 }
 0x3f7   :  { %1537 = vmatprep.mubr.f32.mxu1 %v2774_v10 }
 0x3f8   :  { %1591 = vmatmul.mubr.msk.f32.vlgmr.msra.gmra.mrb[6].mxu0 %vm1398_vm10, %v1391_v35 }
 0x3f9   :  { %1592 = vmatmul.mubr.msk.f32.vlgmr.msra.gmra.mrb[6].mxu1 %vm1398_vm10, %v1391_v35 }
 0x3fe   :  { %v1164_v32 = vpop.permute.xlu1 %1163 }
 0x4c6   :  { %v1247_v3 = vpop.f32.mrb[4].mxu0 }
 0x4c7   :  { %v1248_v49 = vadd.f32 %v1247_v3, %v1164_v32  ;;  %v1249_v2 = vpop.f32.mrb[5].mxu0  ;;  %v1318_v8 = vpop.f32.mrb[4].mxu1 }
 0x4c8   :  { %v1250_v57 = vadd.f32 %v1249_v2, %v1164_v32  ;;  %v1320_v20 = vpop.f32.mrb[5].mxu1  ;;  %v1319_v39 = vadd.f32 %v1318_v8, %v1164_v32 }
 0x4c9   :  { %v1323_v40 = vmax.f32 %v1248_v49, 0.0  ;;  %v1321_v61 = vadd.f32 %v1320_v20, %v1164_v32 }
 0x4ca   :  { %v1324_v43 = vmax.f32 %v1250_v57, 0.0  ;;  %v1325_v41 = vmax.f32 %v1319_v39, 0.0 }
 0x4cb   :  { %1327 = vrot.lane.b32.xlu0 %v1323_v40, %s1748_s24  ;;  %v1468_v46 = vpop.f32.mrb[6].mxu0  ;;  %v1326_v19 = vmax.f32 %v1321_v61, 0.0 }
 0x4cc   :  { %1329 = vrot.lane.b32.xlu1 %v1324_v43, %s1748_s24  ;;  %v1539_v51 = vpop.f32.mrb[6].mxu1  ;;  %v1470_v10 = vpop.f32.mrb[7].mxu0 }
 0x4cd   :  { %v1541_v12 = vpop.f32.mrb[7].mxu1 }
 0x4cf   :  { %1331 = vrot.lane.b32.xlu0 %v1325_v41, %s1748_s24 }
 0x4d0   :  { %1333 = vrot.lane.b32.xlu1 %v1326_v19, %s1748_s24 }
 0x4d3   :  { %1395 = vperm.xlu0 %1664, %v1392_v47  }
 0x53d   :  { %v1328_v5 = vpop.permute.xlu0 %1327 }
 0x53e   :  { %v1330_v59 = vpop.permute.xlu1 %1329 }
 0x53f   :  { %v1337_v16 = vsel %vm241_vm5, %v1328_v5, %v1330_v59 }
 0x540   :  { %v1339_v56 = vmax.f32 %v1323_v40, %v1337_v16 }
 0x541   :  { %v1332_v28 = vpop.permute.xlu0 %1331 }
 0x542   :  { %v1336_v7 = vsel %vm241_vm5, %v1330_v59, %v1332_v28  ;;  %v1334_v45 = vpop.permute.xlu1 %1333  ;;  %1343 = vrot.lane.b32.xlu1 %v1339_v56, %s1749_s25 }
 0x543   :  { %v1340_v21 = vmax.f32 %v1324_v43, %v1336_v7  ;;  %v1335_v14 = vsel %vm241_vm5, %v1332_v28, %v1334_v45  ;;  %v1338_v63 = vsel %vm241_vm5, %v1334_v45, %v1328_v5 }
 0x544   :  { %v1341_v54 = vmax.f32 %v1325_v41, %v1335_v14  ;;  %v1342_v50 = vmax.f32 %v1326_v19, %v1338_v63 }
 0x545   :  { %1345 = vrot.lane.b32.xlu0 %v1340_v21, %s1749_s25 }
 0x546   :  { %1347 = vrot.lane.b32.xlu1 %v1341_v54, %s1749_s25 }
 0x549   :  { %1349 = vrot.lane.b32.xlu0 %v1342_v50, %s1749_s25 }
 0x552   :  { %v1396_v25 = vpop.permute.xlu0 %1395 }
 0x553   :  { %v1469_v27 = vadd.f32 %v1468_v46, %v1396_v25  ;;  %v1471_v17 = vadd.f32 %v1470_v10, %v1396_v25  ;;  %v1540_v9 = vadd.f32 %v1539_v51, %v1396_v25  ;;  %v1542_v0 = vadd.f32 %v1541_v12, %v1396_v25 }
 0x5b4   :  { %v1344_v55 = vpop.permute.xlu1 %1343 }
 0x5b7   :  { %v1346_v26 = vpop.permute.xlu0 %1345 }
 0x5b8   :  { %v1353_v60 = vsel %vm307_vm6, %v1344_v55, %v1346_v26  ;;  %v1348_v6 = vpop.permute.xlu1 %1347 }
 0x5b9   :  { %v1355_v4 = vmax.f32 %v1339_v56, %v1353_v60  ;;  %v1352_v34 = vsel %vm307_vm6, %v1346_v26, %v1348_v6 }
 0x5ba   :  { %v1356_v37 = vmax.f32 %v1340_v21, %v1352_v34 }
 0x5bb   :  { %v1544_v44 = vadd.f32 %v1469_v27, %v1355_v4  ;;  %v1350_v53 = vpop.permute.xlu0 %1349 }
 0x5bc   :  { %v1545_v36 = vadd.f32 %v1471_v17, %v1356_v37  ;;  %v1351_v58 = vsel %vm307_vm6, %v1348_v6, %v1350_v53  ;;  %v1354_v29 = vsel %vm307_vm6, %v1350_v53, %v1344_v55 }
 0x5bd   :  { %1548 = vst [vmem:[#allocation7] sm:$0xff] %v1544_v44  ;;  %v1357_v52 = vmax.f32 %v1341_v54, %v1351_v58  ;;  %v1358_v1 = vmax.f32 %v1342_v50, %v1354_v29 }
 0x5be   :  { %1549 = vst [vmem:[#allocation7 + $0x8] sm:$0xff] %v1545_v36 }
 0x5bf   :  { %v1546_v62 = vadd.f32 %v1540_v9, %v1357_v52  ;;  %v1547_v31 = vadd.f32 %v1542_v0, %v1358_v1 }
 0x5c1   :  { %1550 = vst [vmem:[#allocation7 + $0x10] sm:$0xff] %v1546_v62  ;;  %1551 = vst [vmem:[#allocation7 + $0x18] sm:$0xff] %v1547_v31 }
 0x5c2   :  { %1723 = shalt.err (!%p1720_p6)
}
 0x5c3   :  { %s1724_s19 = scalar_lea.hbm %s2725_s10, 512 }
 0x5c4   :  { %p1725_p7 = scmp.ne.s32.totalorder %s2725_s10, %s1724_s19  ;;  %p1728_p8 = scmp.lt.u32.totalorder %s1724_s19, %s2725_s10 }
 0x5c6   :  { %p1730_p9 = pnand %p1728_p8, %p1725_p7 }
 0x5c8   :  { %1733 = shalt.err (!%p1730_p9)
}
 0x5c9   :  { %1561 = dma.vmem_to_hbm [thread:$0]  %s1559_s17, 512, %s2725_s10, [#allocation4]  }
 0x5ca   :  { %1738 = dma.done.wait [#allocation4], 512  }
 0x5cb   :  { %1739 = vsyncadd [#allocation4], 4294966784 }
 0x5cc   :  { %1565 = vsyncpa [#allocation3], 1 }
 0x5cd   :  { %1566 = vsyncpa [#allocation6], 1 }
 0x5ce   :  { %1567 = vsyncpa [#allocation4], 1 }

</bundles_post_ra>
